<compile_context>
chip_gen: v7x
topology: tpu7x:2x2x1
jax: 0.10.0
libtpu: 0.0.40
codegen_flags: <defaults>
</compile_context>

<pallas_src>
import functools

import jax
import jax.numpy as jnp
from jax.experimental import pallas as pl
from jax.experimental.pallas import tpu as pltpu


def _mm(a, b, dims):
    return jax.lax.dot_general(a, b, (dims, ((), ())),
                               preferred_element_type=jnp.float32)


def _ascnet_kernel(x_ref, wqkv_ref, bqkv_ref, gamma_ref, wih_t_ref, bias_ref,
                   whh_t_ref, mask_ref, out_ref, *, B, N, Cq, C):
    Hh = whh_t_ref.shape[0]

    # ---- fused q/k/v 1x1-conv projection: one MXU launch for all B*N columns ----
    # x columns are time-major: column index = t*B + b.
    qkv = _mm(wqkv_ref[...], x_ref[...], ((1,), (0,))) + bqkv_ref[...]  # (2Cq+C, B*N)
    q = qkv[0:Cq, :]                       # sublane-aligned row slices (Cq % 8 == 0)
    k = qkv[Cq:2 * Cq, :]
    v = qkv[2 * Cq:2 * Cq + C, :]

    # ---- block-diagonal masked attention over all B*N positions at once ----
    energy = _mm(q, k, ((0,), (0,))) + mask_ref[...]          # (B*N, B*N)
    energy = energy - jnp.max(energy, axis=-1, keepdims=True)
    p = jnp.exp(energy)
    att = p / jnp.sum(p, axis=-1, keepdims=True)              # softmax over j
    att_out = _mm(v, att, ((1,), (1,)))                       # (C, B*N)
    sat = gamma_ref[0, 0] * att_out + x_ref[...]              # gamma * out + x

    # ---- pre-stacked LSTM input projections for all steps (biases folded in) ----
    # Rows are time-major (t*B + b), so each step is a contiguous sublane slice.
    ih_all = _mm(sat, wih_t_ref[...], ((0,), (0,))) + bias_ref[...]   # (B*N, 4H)

    # ---- LSTM (batch_first, single layer, gate order i,f,g,o) ----
    # Fully unrolled; h/c carried in registers; all B chains per recurrent matmul.
    w_hh_t = whh_t_ref[...]                                   # (Hh, 4H)
    h = jnp.zeros((B, Hh), jnp.float32)
    c = jnp.zeros((B, Hh), jnp.float32)
    for t in range(N):
        pre = ih_all[t * B:(t + 1) * B, :] + _mm(h, w_hh_t, ((1,), (0,)))  # (B, 4H)
        i_g = jax.nn.sigmoid(pre[:, 0:Hh])
        f_g = jax.nn.sigmoid(pre[:, Hh:2 * Hh])
        g_g = jnp.tanh(pre[:, 2 * Hh:3 * Hh])
        o_g = jax.nn.sigmoid(pre[:, 3 * Hh:4 * Hh])
        c = f_g * c + i_g * g_g
        h = o_g * jnp.tanh(c)
        # Per-step store at a static lane offset (overlaps next step's MXU/EUP work).
        out_ref[:, t * Hh:(t + 1) * Hh] = h


def ascnet_forward(x_nchw, params):
    B, C, H, W = x_nchw.shape
    N = H * W
    Hh = params["w_hh"].shape[0] // 4
    Cq = params["wq"].shape[0]

    # (B, C, H, W) -> (C, N*B): channels on sublanes, TIME-major columns (t*B + b)
    # so the LSTM's per-step ih slice is a contiguous sublane slice.
    x2 = jnp.transpose(x_nchw.reshape(B, C, N).astype(jnp.float32),
                       (1, 2, 0)).reshape(C, N * B)

    # Stacked q/k/v projection weights / biases -> one matmul in-kernel.
    w_qkv = jnp.concatenate(
        [params["wq"], params["wk"], params["wv"]], axis=0).astype(jnp.float32)
    b_qkv = jnp.concatenate(
        [params["bq"], params["bk"], params["bv"]], axis=0
    ).reshape(2 * Cq + C, 1).astype(jnp.float32)

    # Block-diagonal additive mask in time-major column order: col batch = col % B.
    idx = jnp.arange(B * N)
    mask = jnp.where((idx[:, None] % B) == (idx[None, :] % B),
                     0.0, -1e30).astype(jnp.float32)

    consts = (
        w_qkv,                                                   # (2Cq+C, C)
        b_qkv,                                                   # (2Cq+C, 1)
        params["gamma"].reshape(1, 1).astype(jnp.float32),
        params["w_ih"].T.astype(jnp.float32),                    # (C, 4H)
        (params["b_ih"] + params["b_hh"]).reshape(1, 4 * Hh).astype(jnp.float32),
        params["w_hh"].T.astype(jnp.float32),                    # (Hh, 4H)
        mask,                                                    # (B*N, B*N)
    )

    vmem = pl.BlockSpec(memory_space=pltpu.MemorySpace.VMEM)
    out = pl.pallas_call(
        functools.partial(_ascnet_kernel, B=B, N=N, Cq=Cq, C=C),
        out_shape=jax.ShapeDtypeStruct((B, N * Hh), jnp.float32),
        in_specs=[vmem] * (1 + len(consts)),
        out_specs=vmem,
    )(x2, *consts)
    return out                                                   # (B, N*Hh)


def ascnet_reference(x_nchw, params):
    """Plain-JAX reference replicating the PyTorch forward semantics."""
    B, C, H, W = x_nchw.shape
    N = H * W
    Hh = params["w_hh"].shape[0] // 4
    x = x_nchw.reshape(B, C, N)
    q = jnp.einsum('oc,bcn->bon', params['wq'], x) + params['bq'][None, :, None]
    k = jnp.einsum('oc,bcn->bon', params['wk'], x) + params['bk'][None, :, None]
    v = jnp.einsum('oc,bcn->bon', params['wv'], x) + params['bv'][None, :, None]
    energy = jnp.einsum('bci,bcj->bij', q, k)
    att = jax.nn.softmax(energy, axis=-1)
    out = jnp.einsum('bcj,bij->bci', v, att)
    sat = params['gamma'] * out + x
    seq = jnp.transpose(sat, (0, 2, 1))  # (B, N, C)
    w_ih, w_hh = params['w_ih'], params['w_hh']
    b = params['b_ih'] + params['b_hh']

    def step(carry, x_t):
        h, c = carry
        pre = x_t @ w_ih.T + h @ w_hh.T + b
        i = jax.nn.sigmoid(pre[:, :Hh])
        f = jax.nn.sigmoid(pre[:, Hh:2 * Hh])
        g = jnp.tanh(pre[:, 2 * Hh:3 * Hh])
        o = jax.nn.sigmoid(pre[:, 3 * Hh:])
        c = f * c + i * g
        h = o * jnp.tanh(c)
        return (h, c), h

    init = (jnp.zeros((B, Hh), jnp.float32), jnp.zeros((B, Hh), jnp.float32))
    _, ys = jax.lax.scan(step, init, jnp.transpose(seq, (1, 0, 2)))
    return jnp.transpose(ys, (1, 0, 2)).reshape(B, -1)


if __name__ == "__main__":
    key = jax.random.PRNGKey(0)
    B, in_dim, hidden_dim = 2, 64, 32          # small synthetic sizes
    candidate_speakers, clip_number = 3, 4
    C = in_dim * 2                              # LSTM / attention input channels
    Cq = C // 8                                 # query/key channels (SAGAN convention)

    ks = jax.random.split(key, 12)
    s = 0.05
    params = {
        "wq": jax.random.normal(ks[0], (Cq, C), jnp.float32) * s,
        "bq": jax.random.normal(ks[1], (Cq,), jnp.float32) * s,
        "wk": jax.random.normal(ks[2], (Cq, C), jnp.float32) * s,
        "bk": jax.random.normal(ks[3], (Cq,), jnp.float32) * s,
        "wv": jax.random.normal(ks[4], (C, C), jnp.float32) * s,
        "bv": jax.random.normal(ks[5], (C,), jnp.float32) * s,
        # PyTorch initializes gamma to 0; use 0.5 here so the attention branch is exercised.
        "gamma": jnp.array(0.5, jnp.float32),
        "w_ih": jax.random.normal(ks[6], (4 * hidden_dim, C), jnp.float32) * s,
        "b_ih": jax.random.normal(ks[7], (4 * hidden_dim,), jnp.float32) * s,
        "w_hh": jax.random.normal(ks[8], (4 * hidden_dim, hidden_dim), jnp.float32) * s,
        "b_hh": jax.random.normal(ks[9], (4 * hidden_dim,), jnp.float32) * s,
    }
    x = jax.random.normal(ks[10], (B, C, candidate_speakers, clip_number), jnp.float32)

    out = jax.block_until_ready(ascnet_forward(x, params))
    ref = jax.block_until_ready(ascnet_reference(x, params))

    assert out.shape == (B, candidate_speakers * clip_number * hidden_dim), out.shape
    err = float(jnp.max(jnp.abs(out - ref)))
    assert jnp.allclose(out, ref, atol=2e-2, rtol=2e-2), f"max abs err = {err}"
    print("KERNEL_OK")
</pallas_src>

<mosaic_0001>
module attributes {stable_mosaic.version = 11 : i64} {
  func.func @_ascnet_kernel(%arg0: memref<128x24xf32, #tpu.memory_space<vmem>>, %arg1: memref<160x128xf32, #tpu.memory_space<vmem>>, %arg2: memref<160x1xf32, #tpu.memory_space<vmem>>, %arg3: memref<1x1xf32, #tpu.memory_space<vmem>>, %arg4: memref<128x128xf32, #tpu.memory_space<vmem>>, %arg5: memref<1x128xf32, #tpu.memory_space<vmem>>, %arg6: memref<32x128xf32, #tpu.memory_space<vmem>>, %arg7: memref<24x24xf32, #tpu.memory_space<vmem>>, %arg8: memref<2x384xf32, #tpu.memory_space<vmem>>) attributes {dimension_semantics = [], scalar_prefetch = 0 : i64, scratch_operands = 0 : i64, tpu.core_type = #tpu.core_type<tc>} {
    %c0 = arith.constant 0 : index
    %c0_0 = arith.constant 0 : index
    %0 = vector.load %arg1[%c0, %c0_0] : memref<160x128xf32, #tpu.memory_space<vmem>>, vector<160x128xf32>
    %c0_1 = arith.constant 0 : index
    %c0_2 = arith.constant 0 : index
    %1 = vector.load %arg0[%c0_1, %c0_2] : memref<128x24xf32, #tpu.memory_space<vmem>>, vector<128x24xf32>
    %cst = arith.constant dense<0.000000e+00> : vector<160x24xf32>
    %2 = tpu.matmul %0, %1, %cst {dimension_numbers = #tpu.dot_dimension_numbers<[1], [0], [0], [1], [0, 0, 1, 1], [], []>} : vector<160x128xf32>, vector<128x24xf32>, vector<160x24xf32> -> vector<160x24xf32>
    %c0_3 = arith.constant 0 : index
    %c0_4 = arith.constant 0 : index
    %3 = vector.load %arg2[%c0_3, %c0_4] : memref<160x1xf32, #tpu.memory_space<vmem>>, vector<160x1xf32>
    %4 = vector.broadcast %3 : vector<160x1xf32> to vector<160x24xf32>
    %5 = arith.addf %2, %4 : vector<160x24xf32>
    %6 = vector.extract_strided_slice %5 {offsets = [0, 0], sizes = [16, 24], strides = [1, 1]} : vector<160x24xf32> to vector<16x24xf32>
    %7 = vector.extract_strided_slice %5 {offsets = [16, 0], sizes = [16, 24], strides = [1, 1]} : vector<160x24xf32> to vector<16x24xf32>
    %8 = vector.extract_strided_slice %5 {offsets = [32, 0], sizes = [128, 24], strides = [1, 1]} : vector<160x24xf32> to vector<128x24xf32>
    %cst_5 = arith.constant dense<0.000000e+00> : vector<24x24xf32>
    %9 = tpu.matmul %6, %7, %cst_5 {dimension_numbers = #tpu.dot_dimension_numbers<[0], [0], [1], [1], [0, 1, 1, 1], [], []>} : vector<16x24xf32>, vector<16x24xf32>, vector<24x24xf32> -> vector<24x24xf32>
    %c0_6 = arith.constant 0 : index
    %c0_7 = arith.constant 0 : index
    %10 = vector.load %arg7[%c0_6, %c0_7] : memref<24x24xf32, #tpu.memory_space<vmem>>, vector<24x24xf32>
    %11 = arith.addf %9, %10 : vector<24x24xf32>
    %cst_8 = arith.constant dense<0xFF800000> : vector<24xf32>
    %12 = vector.multi_reduction <maximumf>, %11, %cst_8 [1] : vector<24x24xf32> to vector<24xf32>
    %13 = vector.shape_cast %12 : vector<24xf32> to vector<24x1xf32>
    %14 = vector.broadcast %13 : vector<24x1xf32> to vector<24x24xf32>
    %15 = arith.subf %11, %14 : vector<24x24xf32>
    %16 = math.exp %15 : vector<24x24xf32>
    %cst_9 = arith.constant dense<0.000000e+00> : vector<24xf32>
    %17 = vector.multi_reduction <add>, %16, %cst_9 [1] : vector<24x24xf32> to vector<24xf32>
    %18 = vector.shape_cast %17 : vector<24xf32> to vector<24x1xf32>
    %19 = vector.broadcast %18 : vector<24x1xf32> to vector<24x24xf32>
    %20 = arith.divf %16, %19 : vector<24x24xf32>
    %cst_10 = arith.constant dense<0.000000e+00> : vector<128x24xf32>
    %21 = tpu.matmul %8, %20, %cst_10 {dimension_numbers = #tpu.dot_dimension_numbers<[1], [1], [0], [0], [0, 0, 1, 0], [], []>} : vector<128x24xf32>, vector<24x24xf32>, vector<128x24xf32> -> vector<128x24xf32>
    %c0_11 = arith.constant 0 : index
    %c0_12 = arith.constant 0 : index
    %22 = vector.load %arg3[%c0_11, %c0_12] : memref<1x1xf32, #tpu.memory_space<vmem>>, vector<1x1xf32>
    %23 = vector.extract %22[0, 0] : f32 from vector<1x1xf32>
    %24 = vector.broadcast %23 : f32 to vector<128x24xf32>
    %25 = arith.mulf %24, %21 : vector<128x24xf32>
    %c0_13 = arith.constant 0 : index
    %c0_14 = arith.constant 0 : index
    %26 = vector.load %arg0[%c0_13, %c0_14] : memref<128x24xf32, #tpu.memory_space<vmem>>, vector<128x24xf32>
    %27 = arith.addf %25, %26 : vector<128x24xf32>
    %c0_15 = arith.constant 0 : index
    %c0_16 = arith.constant 0 : index
    %28 = vector.load %arg4[%c0_15, %c0_16] : memref<128x128xf32, #tpu.memory_space<vmem>>, vector<128x128xf32>
    %cst_17 = arith.constant dense<0.000000e+00> : vector<24x128xf32>
    %29 = tpu.matmul %27, %28, %cst_17 {dimension_numbers = #tpu.dot_dimension_numbers<[0], [0], [1], [1], [0, 1, 1, 1], [], []>} : vector<128x24xf32>, vector<128x128xf32>, vector<24x128xf32> -> vector<24x128xf32>
    %c0_18 = arith.constant 0 : index
    %c0_19 = arith.constant 0 : index
    %30 = vector.load %arg5[%c0_18, %c0_19] : memref<1x128xf32, #tpu.memory_space<vmem>>, vector<1x128xf32>
    %31 = vector.broadcast %30 : vector<1x128xf32> to vector<24x128xf32>
    %32 = arith.addf %29, %31 : vector<24x128xf32>
    %c0_20 = arith.constant 0 : index
    %c0_21 = arith.constant 0 : index
    %33 = vector.load %arg6[%c0_20, %c0_21] : memref<32x128xf32, #tpu.memory_space<vmem>>, vector<32x128xf32>
    %cst_22 = arith.constant 0.000000e+00 : f32
    %34 = vector.broadcast %cst_22 : f32 to vector<2x32xf32>
    %cst_23 = arith.constant 0.000000e+00 : f32
    %35 = vector.broadcast %cst_23 : f32 to vector<2x32xf32>
    %36 = vector.extract_strided_slice %32 {offsets = [0, 0], sizes = [2, 128], strides = [1, 1]} : vector<24x128xf32> to vector<2x128xf32>
    %cst_24 = arith.constant dense<0.000000e+00> : vector<2x128xf32>
    %37 = tpu.matmul %34, %33, %cst_24 {dimension_numbers = #tpu.dot_dimension_numbers<[1], [0], [0], [1], [0, 0, 1, 1], [], []>} : vector<2x32xf32>, vector<32x128xf32>, vector<2x128xf32> -> vector<2x128xf32>
    %38 = arith.addf %36, %37 : vector<2x128xf32>
    %39 = vector.extract_strided_slice %38 {offsets = [0, 0], sizes = [2, 32], strides = [1, 1]} : vector<2x128xf32> to vector<2x32xf32>
    %40 = arith.negf %39 : vector<2x32xf32>
    %41 = math.exp %40 : vector<2x32xf32>
    %cst_25 = arith.constant 1.000000e+00 : f32
    %42 = vector.broadcast %cst_25 : f32 to vector<2x32xf32>
    %43 = arith.addf %42, %41 : vector<2x32xf32>
    %44 = arith.divf %42, %43 : vector<2x32xf32>
    %45 = vector.extract_strided_slice %38 {offsets = [0, 32], sizes = [2, 32], strides = [1, 1]} : vector<2x128xf32> to vector<2x32xf32>
    %46 = arith.negf %45 : vector<2x32xf32>
    %47 = math.exp %46 : vector<2x32xf32>
    %cst_26 = arith.constant 1.000000e+00 : f32
    %48 = vector.broadcast %cst_26 : f32 to vector<2x32xf32>
    %49 = arith.addf %48, %47 : vector<2x32xf32>
    %50 = arith.divf %48, %49 : vector<2x32xf32>
    %51 = vector.extract_strided_slice %38 {offsets = [0, 64], sizes = [2, 32], strides = [1, 1]} : vector<2x128xf32> to vector<2x32xf32>
    %52 = math.tanh %51 : vector<2x32xf32>
    %53 = vector.extract_strided_slice %38 {offsets = [0, 96], sizes = [2, 32], strides = [1, 1]} : vector<2x128xf32> to vector<2x32xf32>
    %54 = arith.negf %53 : vector<2x32xf32>
    %55 = math.exp %54 : vector<2x32xf32>
    %cst_27 = arith.constant 1.000000e+00 : f32
    %56 = vector.broadcast %cst_27 : f32 to vector<2x32xf32>
    %57 = arith.addf %56, %55 : vector<2x32xf32>
    %58 = arith.divf %56, %57 : vector<2x32xf32>
    %59 = arith.mulf %50, %35 : vector<2x32xf32>
    %60 = arith.mulf %44, %52 : vector<2x32xf32>
    %61 = arith.addf %59, %60 : vector<2x32xf32>
    %62 = math.tanh %61 : vector<2x32xf32>
    %63 = arith.mulf %58, %62 : vector<2x32xf32>
    %c0_28 = arith.constant 0 : index
    %c0_29 = arith.constant 0 : index
    %64 = vector.load %arg8[%c0_28, %c0_29] : memref<2x384xf32, #tpu.memory_space<vmem>>, vector<2x32xf32>
    tpu.vector_store %arg8[%c0_28, %c0_29], %63 {strides = array<i32>} : memref<2x384xf32, #tpu.memory_space<vmem>>, vector<2x32xf32>,
    %65 = vector.extract_strided_slice %32 {offsets = [2, 0], sizes = [2, 128], strides = [1, 1]} : vector<24x128xf32> to vector<2x128xf32>
    %cst_30 = arith.constant dense<0.000000e+00> : vector<2x128xf32>
    %66 = tpu.matmul %63, %33, %cst_30 {dimension_numbers = #tpu.dot_dimension_numbers<[1], [0], [0], [1], [0, 0, 1, 1], [], []>} : vector<2x32xf32>, vector<32x128xf32>, vector<2x128xf32> -> vector<2x128xf32>
    %67 = arith.addf %65, %66 : vector<2x128xf32>
    %68 = vector.extract_strided_slice %67 {offsets = [0, 0], sizes = [2, 32], strides = [1, 1]} : vector<2x128xf32> to vector<2x32xf32>
    %69 = arith.negf %68 : vector<2x32xf32>
    %70 = math.exp %69 : vector<2x32xf32>
    %cst_31 = arith.constant 1.000000e+00 : f32
    %71 = vector.broadcast %cst_31 : f32 to vector<2x32xf32>
    %72 = arith.addf %71, %70 : vector<2x32xf32>
    %73 = arith.divf %71, %72 : vector<2x32xf32>
    %74 = vector.extract_strided_slice %67 {offsets = [0, 32], sizes = [2, 32], strides = [1, 1]} : vector<2x128xf32> to vector<2x32xf32>
    %75 = arith.negf %74 : vector<2x32xf32>
    %76 = math.exp %75 : vector<2x32xf32>
    %cst_32 = arith.constant 1.000000e+00 : f32
    %77 = vector.broadcast %cst_32 : f32 to vector<2x32xf32>
    %78 = arith.addf %77, %76 : vector<2x32xf32>
    %79 = arith.divf %77, %78 : vector<2x32xf32>
    %80 = vector.extract_strided_slice %67 {offsets = [0, 64], sizes = [2, 32], strides = [1, 1]} : vector<2x128xf32> to vector<2x32xf32>
    %81 = math.tanh %80 : vector<2x32xf32>
    %82 = vector.extract_strided_slice %67 {offsets = [0, 96], sizes = [2, 32], strides = [1, 1]} : vector<2x128xf32> to vector<2x32xf32>
    %83 = arith.negf %82 : vector<2x32xf32>
    %84 = math.exp %83 : vector<2x32xf32>
    %cst_33 = arith.constant 1.000000e+00 : f32
    %85 = vector.broadcast %cst_33 : f32 to vector<2x32xf32>
    %86 = arith.addf %85, %84 : vector<2x32xf32>
    %87 = arith.divf %85, %86 : vector<2x32xf32>
    %88 = arith.mulf %79, %61 : vector<2x32xf32>
    %89 = arith.mulf %73, %81 : vector<2x32xf32>
    %90 = arith.addf %88, %89 : vector<2x32xf32>
    %91 = math.tanh %90 : vector<2x32xf32>
    %92 = arith.mulf %87, %91 : vector<2x32xf32>
    %c0_34 = arith.constant 0 : index
    %c32 = arith.constant 32 : index
    %93 = vector.load %arg8[%c0_34, %c32] : memref<2x384xf32, #tpu.memory_space<vmem>>, vector<2x32xf32>
    tpu.vector_store %arg8[%c0_34, %c32], %92 {strides = array<i32>} : memref<2x384xf32, #tpu.memory_space<vmem>>, vector<2x32xf32>,
    %94 = vector.extract_strided_slice %32 {offsets = [4, 0], sizes = [2, 128], strides = [1, 1]} : vector<24x128xf32> to vector<2x128xf32>
    %cst_35 = arith.constant dense<0.000000e+00> : vector<2x128xf32>
    %95 = tpu.matmul %92, %33, %cst_35 {dimension_numbers = #tpu.dot_dimension_numbers<[1], [0], [0], [1], [0, 0, 1, 1], [], []>} : vector<2x32xf32>, vector<32x128xf32>, vector<2x128xf32> -> vector<2x128xf32>
    %96 = arith.addf %94, %95 : vector<2x128xf32>
    %97 = vector.extract_strided_slice %96 {offsets = [0, 0], sizes = [2, 32], strides = [1, 1]} : vector<2x128xf32> to vector<2x32xf32>
    %98 = arith.negf %97 : vector<2x32xf32>
    %99 = math.exp %98 : vector<2x32xf32>
    %cst_36 = arith.constant 1.000000e+00 : f32
    %100 = vector.broadcast %cst_36 : f32 to vector<2x32xf32>
    %101 = arith.addf %100, %99 : vector<2x32xf32>
    %102 = arith.divf %100, %101 : vector<2x32xf32>
    %103 = vector.extract_strided_slice %96 {offsets = [0, 32], sizes = [2, 32], strides = [1, 1]} : vector<2x128xf32> to vector<2x32xf32>
    %104 = arith.negf %103 : vector<2x32xf32>
    %105 = math.exp %104 : vector<2x32xf32>
    %cst_37 = arith.constant 1.000000e+00 : f32
    %106 = vector.broadcast %cst_37 : f32 to vector<2x32xf32>
    %107 = arith.addf %106, %105 : vector<2x32xf32>
    %108 = arith.divf %106, %107 : vector<2x32xf32>
    %109 = vector.extract_strided_slice %96 {offsets = [0, 64], sizes = [2, 32], strides = [1, 1]} : vector<2x128xf32> to vector<2x32xf32>
    %110 = math.tanh %109 : vector<2x32xf32>
    %111 = vector.extract_strided_slice %96 {offsets = [0, 96], sizes = [2, 32], strides = [1, 1]} : vector<2x128xf32> to vector<2x32xf32>
    %112 = arith.negf %111 : vector<2x32xf32>
    %113 = math.exp %112 : vector<2x32xf32>
    %cst_38 = arith.constant 1.000000e+00 : f32
    %114 = vector.broadcast %cst_38 : f32 to vector<2x32xf32>
    %115 = arith.addf %114, %113 : vector<2x32xf32>
    %116 = arith.divf %114, %115 : vector<2x32xf32>
    %117 = arith.mulf %108, %90 : vector<2x32xf32>
    %118 = arith.mulf %102, %110 : vector<2x32xf32>
    %119 = arith.addf %117, %118 : vector<2x32xf32>
    %120 = math.tanh %119 : vector<2x32xf32>
    %121 = arith.mulf %116, %120 : vector<2x32xf32>
    %c0_39 = arith.constant 0 : index
    %c64 = arith.constant 64 : index
    %122 = vector.load %arg8[%c0_39, %c64] : memref<2x384xf32, #tpu.memory_space<vmem>>, vector<2x32xf32>
    tpu.vector_store %arg8[%c0_39, %c64], %121 {strides = array<i32>} : memref<2x384xf32, #tpu.memory_space<vmem>>, vector<2x32xf32>,
    %123 = vector.extract_strided_slice %32 {offsets = [6, 0], sizes = [2, 128], strides = [1, 1]} : vector<24x128xf32> to vector<2x128xf32>
    %cst_40 = arith.constant dense<0.000000e+00> : vector<2x128xf32>
    %124 = tpu.matmul %121, %33, %cst_40 {dimension_numbers = #tpu.dot_dimension_numbers<[1], [0], [0], [1], [0, 0, 1, 1], [], []>} : vector<2x32xf32>, vector<32x128xf32>, vector<2x128xf32> -> vector<2x128xf32>
    %125 = arith.addf %123, %124 : vector<2x128xf32>
    %126 = vector.extract_strided_slice %125 {offsets = [0, 0], sizes = [2, 32], strides = [1, 1]} : vector<2x128xf32> to vector<2x32xf32>
    %127 = arith.negf %126 : vector<2x32xf32>
    %128 = math.exp %127 : vector<2x32xf32>
    %cst_41 = arith.constant 1.000000e+00 : f32
    %129 = vector.broadcast %cst_41 : f32 to vector<2x32xf32>
    %130 = arith.addf %129, %128 : vector<2x32xf32>
    %131 = arith.divf %129, %130 : vector<2x32xf32>
    %132 = vector.extract_strided_slice %125 {offsets = [0, 32], sizes = [2, 32], strides = [1, 1]} : vector<2x128xf32> to vector<2x32xf32>
    %133 = arith.negf %132 : vector<2x32xf32>
    %134 = math.exp %133 : vector<2x32xf32>
    %cst_42 = arith.constant 1.000000e+00 : f32
    %135 = vector.broadcast %cst_42 : f32 to vector<2x32xf32>
    %136 = arith.addf %135, %134 : vector<2x32xf32>
    %137 = arith.divf %135, %136 : vector<2x32xf32>
    %138 = vector.extract_strided_slice %125 {offsets = [0, 64], sizes = [2, 32], strides = [1, 1]} : vector<2x128xf32> to vector<2x32xf32>
    %139 = math.tanh %138 : vector<2x32xf32>
    %140 = vector.extract_strided_slice %125 {offsets = [0, 96], sizes = [2, 32], strides = [1, 1]} : vector<2x128xf32> to vector<2x32xf32>
    %141 = arith.negf %140 : vector<2x32xf32>
    %142 = math.exp %141 : vector<2x32xf32>
    %cst_43 = arith.constant 1.000000e+00 : f32
    %143 = vector.broadcast %cst_43 : f32 to vector<2x32xf32>
    %144 = arith.addf %143, %142 : vector<2x32xf32>
    %145 = arith.divf %143, %144 : vector<2x32xf32>
    %146 = arith.mulf %137, %119 : vector<2x32xf32>
    %147 = arith.mulf %131, %139 : vector<2x32xf32>
    %148 = arith.addf %146, %147 : vector<2x32xf32>
    %149 = math.tanh %148 : vector<2x32xf32>
    %150 = arith.mulf %145, %149 : vector<2x32xf32>
    %c0_44 = arith.constant 0 : index
    %c96 = arith.constant 96 : index
    %151 = vector.load %arg8[%c0_44, %c96] : memref<2x384xf32, #tpu.memory_space<vmem>>, vector<2x32xf32>
    tpu.vector_store %arg8[%c0_44, %c96], %150 {strides = array<i32>} : memref<2x384xf32, #tpu.memory_space<vmem>>, vector<2x32xf32>,
    %152 = vector.extract_strided_slice %32 {offsets = [8, 0], sizes = [2, 128], strides = [1, 1]} : vector<24x128xf32> to vector<2x128xf32>
    %cst_45 = arith.constant dense<0.000000e+00> : vector<2x128xf32>
    %153 = tpu.matmul %150, %33, %cst_45 {dimension_numbers = #tpu.dot_dimension_numbers<[1], [0], [0], [1], [0, 0, 1, 1], [], []>} : vector<2x32xf32>, vector<32x128xf32>, vector<2x128xf32> -> vector<2x128xf32>
    %154 = arith.addf %152, %153 : vector<2x128xf32>
    %155 = vector.extract_strided_slice %154 {offsets = [0, 0], sizes = [2, 32], strides = [1, 1]} : vector<2x128xf32> to vector<2x32xf32>
    %156 = arith.negf %155 : vector<2x32xf32>
    %157 = math.exp %156 : vector<2x32xf32>
    %cst_46 = arith.constant 1.000000e+00 : f32
    %158 = vector.broadcast %cst_46 : f32 to vector<2x32xf32>
    %159 = arith.addf %158, %157 : vector<2x32xf32>
    %160 = arith.divf %158, %159 : vector<2x32xf32>
    %161 = vector.extract_strided_slice %154 {offsets = [0, 32], sizes = [2, 32], strides = [1, 1]} : vector<2x128xf32> to vector<2x32xf32>
    %162 = arith.negf %161 : vector<2x32xf32>
    %163 = math.exp %162 : vector<2x32xf32>
    %cst_47 = arith.constant 1.000000e+00 : f32
    %164 = vector.broadcast %cst_47 : f32 to vector<2x32xf32>
    %165 = arith.addf %164, %163 : vector<2x32xf32>
    %166 = arith.divf %164, %165 : vector<2x32xf32>
    %167 = vector.extract_strided_slice %154 {offsets = [0, 64], sizes = [2, 32], strides = [1, 1]} : vector<2x128xf32> to vector<2x32xf32>
    %168 = math.tanh %167 : vector<2x32xf32>
    %169 = vector.extract_strided_slice %154 {offsets = [0, 96], sizes = [2, 32], strides = [1, 1]} : vector<2x128xf32> to vector<2x32xf32>
    %170 = arith.negf %169 : vector<2x32xf32>
    %171 = math.exp %170 : vector<2x32xf32>
    %cst_48 = arith.constant 1.000000e+00 : f32
    %172 = vector.broadcast %cst_48 : f32 to vector<2x32xf32>
    %173 = arith.addf %172, %171 : vector<2x32xf32>
    %174 = arith.divf %172, %173 : vector<2x32xf32>
    %175 = arith.mulf %166, %148 : vector<2x32xf32>
    %176 = arith.mulf %160, %168 : vector<2x32xf32>
    %177 = arith.addf %175, %176 : vector<2x32xf32>
    %178 = math.tanh %177 : vector<2x32xf32>
    %179 = arith.mulf %174, %178 : vector<2x32xf32>
    %c0_49 = arith.constant 0 : index
    %c128 = arith.constant 128 : index
    %180 = vector.load %arg8[%c0_49, %c128] : memref<2x384xf32, #tpu.memory_space<vmem>>, vector<2x32xf32>
    tpu.vector_store %arg8[%c0_49, %c128], %179 {strides = array<i32>} : memref<2x384xf32, #tpu.memory_space<vmem>>, vector<2x32xf32>,
    %181 = vector.extract_strided_slice %32 {offsets = [10, 0], sizes = [2, 128], strides = [1, 1]} : vector<24x128xf32> to vector<2x128xf32>
    %cst_50 = arith.constant dense<0.000000e+00> : vector<2x128xf32>
    %182 = tpu.matmul %179, %33, %cst_50 {dimension_numbers = #tpu.dot_dimension_numbers<[1], [0], [0], [1], [0, 0, 1, 1], [], []>} : vector<2x32xf32>, vector<32x128xf32>, vector<2x128xf32> -> vector<2x128xf32>
    %183 = arith.addf %181, %182 : vector<2x128xf32>
    %184 = vector.extract_strided_slice %183 {offsets = [0, 0], sizes = [2, 32], strides = [1, 1]} : vector<2x128xf32> to vector<2x32xf32>
    %185 = arith.negf %184 : vector<2x32xf32>
    %186 = math.exp %185 : vector<2x32xf32>
    %cst_51 = arith.constant 1.000000e+00 : f32
    %187 = vector.broadcast %cst_51 : f32 to vector<2x32xf32>
    %188 = arith.addf %187, %186 : vector<2x32xf32>
    %189 = arith.divf %187, %188 : vector<2x32xf32>
    %190 = vector.extract_strided_slice %183 {offsets = [0, 32], sizes = [2, 32], strides = [1, 1]} : vector<2x128xf32> to vector<2x32xf32>
    %191 = arith.negf %190 : vector<2x32xf32>
    %192 = math.exp %191 : vector<2x32xf32>
    %cst_52 = arith.constant 1.000000e+00 : f32
    %193 = vector.broadcast %cst_52 : f32 to vector<2x32xf32>
    %194 = arith.addf %193, %192 : vector<2x32xf32>
    %195 = arith.divf %193, %194 : vector<2x32xf32>
    %196 = vector.extract_strided_slice %183 {offsets = [0, 64], sizes = [2, 32], strides = [1, 1]} : vector<2x128xf32> to vector<2x32xf32>
    %197 = math.tanh %196 : vector<2x32xf32>
    %198 = vector.extract_strided_slice %183 {offsets = [0, 96], sizes = [2, 32], strides = [1, 1]} : vector<2x128xf32> to vector<2x32xf32>
    %199 = arith.negf %198 : vector<2x32xf32>
    %200 = math.exp %199 : vector<2x32xf32>
    %cst_53 = arith.constant 1.000000e+00 : f32
    %201 = vector.broadcast %cst_53 : f32 to vector<2x32xf32>
    %202 = arith.addf %201, %200 : vector<2x32xf32>
    %203 = arith.divf %201, %202 : vector<2x32xf32>
    %204 = arith.mulf %195, %177 : vector<2x32xf32>
    %205 = arith.mulf %189, %197 : vector<2x32xf32>
    %206 = arith.addf %204, %205 : vector<2x32xf32>
    %207 = math.tanh %206 : vector<2x32xf32>
    %208 = arith.mulf %203, %207 : vector<2x32xf32>
    %c0_54 = arith.constant 0 : index
    %c160 = arith.constant 160 : index
    %209 = vector.load %arg8[%c0_54, %c160] : memref<2x384xf32, #tpu.memory_space<vmem>>, vector<2x32xf32>
    tpu.vector_store %arg8[%c0_54, %c160], %208 {strides = array<i32>} : memref<2x384xf32, #tpu.memory_space<vmem>>, vector<2x32xf32>,
    %210 = vector.extract_strided_slice %32 {offsets = [12, 0], sizes = [2, 128], strides = [1, 1]} : vector<24x128xf32> to vector<2x128xf32>
    %cst_55 = arith.constant dense<0.000000e+00> : vector<2x128xf32>
    %211 = tpu.matmul %208, %33, %cst_55 {dimension_numbers = #tpu.dot_dimension_numbers<[1], [0], [0], [1], [0, 0, 1, 1], [], []>} : vector<2x32xf32>, vector<32x128xf32>, vector<2x128xf32> -> vector<2x128xf32>
    %212 = arith.addf %210, %211 : vector<2x128xf32>
    %213 = vector.extract_strided_slice %212 {offsets = [0, 0], sizes = [2, 32], strides = [1, 1]} : vector<2x128xf32> to vector<2x32xf32>
    %214 = arith.negf %213 : vector<2x32xf32>
    %215 = math.exp %214 : vector<2x32xf32>
    %cst_56 = arith.constant 1.000000e+00 : f32
    %216 = vector.broadcast %cst_56 : f32 to vector<2x32xf32>
    %217 = arith.addf %216, %215 : vector<2x32xf32>
    %218 = arith.divf %216, %217 : vector<2x32xf32>
    %219 = vector.extract_strided_slice %212 {offsets = [0, 32], sizes = [2, 32], strides = [1, 1]} : vector<2x128xf32> to vector<2x32xf32>
    %220 = arith.negf %219 : vector<2x32xf32>
    %221 = math.exp %220 : vector<2x32xf32>
    %cst_57 = arith.constant 1.000000e+00 : f32
    %222 = vector.broadcast %cst_57 : f32 to vector<2x32xf32>
    %223 = arith.addf %222, %221 : vector<2x32xf32>
    %224 = arith.divf %222, %223 : vector<2x32xf32>
    %225 = vector.extract_strided_slice %212 {offsets = [0, 64], sizes = [2, 32], strides = [1, 1]} : vector<2x128xf32> to vector<2x32xf32>
    %226 = math.tanh %225 : vector<2x32xf32>
    %227 = vector.extract_strided_slice %212 {offsets = [0, 96], sizes = [2, 32], strides = [1, 1]} : vector<2x128xf32> to vector<2x32xf32>
    %228 = arith.negf %227 : vector<2x32xf32>
    %229 = math.exp %228 : vector<2x32xf32>
    %cst_58 = arith.constant 1.000000e+00 : f32
    %230 = vector.broadcast %cst_58 : f32 to vector<2x32xf32>
    %231 = arith.addf %230, %229 : vector<2x32xf32>
    %232 = arith.divf %230, %231 : vector<2x32xf32>
    %233 = arith.mulf %224, %206 : vector<2x32xf32>
    %234 = arith.mulf %218, %226 : vector<2x32xf32>
    %235 = arith.addf %233, %234 : vector<2x32xf32>
    %236 = math.tanh %235 : vector<2x32xf32>
    %237 = arith.mulf %232, %236 : vector<2x32xf32>
    %c0_59 = arith.constant 0 : index
    %c192 = arith.constant 192 : index
    %238 = vector.load %arg8[%c0_59, %c192] : memref<2x384xf32, #tpu.memory_space<vmem>>, vector<2x32xf32>
    tpu.vector_store %arg8[%c0_59, %c192], %237 {strides = array<i32>} : memref<2x384xf32, #tpu.memory_space<vmem>>, vector<2x32xf32>,
    %239 = vector.extract_strided_slice %32 {offsets = [14, 0], sizes = [2, 128], strides = [1, 1]} : vector<24x128xf32> to vector<2x128xf32>
    %cst_60 = arith.constant dense<0.000000e+00> : vector<2x128xf32>
    %240 = tpu.matmul %237, %33, %cst_60 {dimension_numbers = #tpu.dot_dimension_numbers<[1], [0], [0], [1], [0, 0, 1, 1], [], []>} : vector<2x32xf32>, vector<32x128xf32>, vector<2x128xf32> -> vector<2x128xf32>
    %241 = arith.addf %239, %240 : vector<2x128xf32>
    %242 = vector.extract_strided_slice %241 {offsets = [0, 0], sizes = [2, 32], strides = [1, 1]} : vector<2x128xf32> to vector<2x32xf32>
    %243 = arith.negf %242 : vector<2x32xf32>
    %244 = math.exp %243 : vector<2x32xf32>
    %cst_61 = arith.constant 1.000000e+00 : f32
    %245 = vector.broadcast %cst_61 : f32 to vector<2x32xf32>
    %246 = arith.addf %245, %244 : vector<2x32xf32>
    %247 = arith.divf %245, %246 : vector<2x32xf32>
    %248 = vector.extract_strided_slice %241 {offsets = [0, 32], sizes = [2, 32], strides = [1, 1]} : vector<2x128xf32> to vector<2x32xf32>
    %249 = arith.negf %248 : vector<2x32xf32>
    %250 = math.exp %249 : vector<2x32xf32>
    %cst_62 = arith.constant 1.000000e+00 : f32
    %251 = vector.broadcast %cst_62 : f32 to vector<2x32xf32>
    %252 = arith.addf %251, %250 : vector<2x32xf32>
    %253 = arith.divf %251, %252 : vector<2x32xf32>
    %254 = vector.extract_strided_slice %241 {offsets = [0, 64], sizes = [2, 32], strides = [1, 1]} : vector<2x128xf32> to vector<2x32xf32>
    %255 = math.tanh %254 : vector<2x32xf32>
    %256 = vector.extract_strided_slice %241 {offsets = [0, 96], sizes = [2, 32], strides = [1, 1]} : vector<2x128xf32> to vector<2x32xf32>
    %257 = arith.negf %256 : vector<2x32xf32>
    %258 = math.exp %257 : vector<2x32xf32>
    %cst_63 = arith.constant 1.000000e+00 : f32
    %259 = vector.broadcast %cst_63 : f32 to vector<2x32xf32>
    %260 = arith.addf %259, %258 : vector<2x32xf32>
    %261 = arith.divf %259, %260 : vector<2x32xf32>
    %262 = arith.mulf %253, %235 : vector<2x32xf32>
    %263 = arith.mulf %247, %255 : vector<2x32xf32>
    %264 = arith.addf %262, %263 : vector<2x32xf32>
    %265 = math.tanh %264 : vector<2x32xf32>
    %266 = arith.mulf %261, %265 : vector<2x32xf32>
    %c0_64 = arith.constant 0 : index
    %c224 = arith.constant 224 : index
    %267 = vector.load %arg8[%c0_64, %c224] : memref<2x384xf32, #tpu.memory_space<vmem>>, vector<2x32xf32>
    tpu.vector_store %arg8[%c0_64, %c224], %266 {strides = array<i32>} : memref<2x384xf32, #tpu.memory_space<vmem>>, vector<2x32xf32>,
    %268 = vector.extract_strided_slice %32 {offsets = [16, 0], sizes = [2, 128], strides = [1, 1]} : vector<24x128xf32> to vector<2x128xf32>
    %cst_65 = arith.constant dense<0.000000e+00> : vector<2x128xf32>
    %269 = tpu.matmul %266, %33, %cst_65 {dimension_numbers = #tpu.dot_dimension_numbers<[1], [0], [0], [1], [0, 0, 1, 1], [], []>} : vector<2x32xf32>, vector<32x128xf32>, vector<2x128xf32> -> vector<2x128xf32>
    %270 = arith.addf %268, %269 : vector<2x128xf32>
    %271 = vector.extract_strided_slice %270 {offsets = [0, 0], sizes = [2, 32], strides = [1, 1]} : vector<2x128xf32> to vector<2x32xf32>
    %272 = arith.negf %271 : vector<2x32xf32>
    %273 = math.exp %272 : vector<2x32xf32>
    %cst_66 = arith.constant 1.000000e+00 : f32
    %274 = vector.broadcast %cst_66 : f32 to vector<2x32xf32>
    %275 = arith.addf %274, %273 : vector<2x32xf32>
    %276 = arith.divf %274, %275 : vector<2x32xf32>
    %277 = vector.extract_strided_slice %270 {offsets = [0, 32], sizes = [2, 32], strides = [1, 1]} : vector<2x128xf32> to vector<2x32xf32>
    %278 = arith.negf %277 : vector<2x32xf32>
    %279 = math.exp %278 : vector<2x32xf32>
    %cst_67 = arith.constant 1.000000e+00 : f32
    %280 = vector.broadcast %cst_67 : f32 to vector<2x32xf32>
    %281 = arith.addf %280, %279 : vector<2x32xf32>
    %282 = arith.divf %280, %281 : vector<2x32xf32>
    %283 = vector.extract_strided_slice %270 {offsets = [0, 64], sizes = [2, 32], strides = [1, 1]} : vector<2x128xf32> to vector<2x32xf32>
    %284 = math.tanh %283 : vector<2x32xf32>
    %285 = vector.extract_strided_slice %270 {offsets = [0, 96], sizes = [2, 32], strides = [1, 1]} : vector<2x128xf32> to vector<2x32xf32>
    %286 = arith.negf %285 : vector<2x32xf32>
    %287 = math.exp %286 : vector<2x32xf32>
    %cst_68 = arith.constant 1.000000e+00 : f32
    %288 = vector.broadcast %cst_68 : f32 to vector<2x32xf32>
    %289 = arith.addf %288, %287 : vector<2x32xf32>
    %290 = arith.divf %288, %289 : vector<2x32xf32>
    %291 = arith.mulf %282, %264 : vector<2x32xf32>
    %292 = arith.mulf %276, %284 : vector<2x32xf32>
    %293 = arith.addf %291, %292 : vector<2x32xf32>
    %294 = math.tanh %293 : vector<2x32xf32>
    %295 = arith.mulf %290, %294 : vector<2x32xf32>
    %c0_69 = arith.constant 0 : index
    %c256 = arith.constant 256 : index
    %296 = vector.load %arg8[%c0_69, %c256] : memref<2x384xf32, #tpu.memory_space<vmem>>, vector<2x32xf32>
    tpu.vector_store %arg8[%c0_69, %c256], %295 {strides = array<i32>} : memref<2x384xf32, #tpu.memory_space<vmem>>, vector<2x32xf32>,
    %297 = vector.extract_strided_slice %32 {offsets = [18, 0], sizes = [2, 128], strides = [1, 1]} : vector<24x128xf32> to vector<2x128xf32>
    %cst_70 = arith.constant dense<0.000000e+00> : vector<2x128xf32>
    %298 = tpu.matmul %295, %33, %cst_70 {dimension_numbers = #tpu.dot_dimension_numbers<[1], [0], [0], [1], [0, 0, 1, 1], [], []>} : vector<2x32xf32>, vector<32x128xf32>, vector<2x128xf32> -> vector<2x128xf32>
    %299 = arith.addf %297, %298 : vector<2x128xf32>
    %300 = vector.extract_strided_slice %299 {offsets = [0, 0], sizes = [2, 32], strides = [1, 1]} : vector<2x128xf32> to vector<2x32xf32>
    %301 = arith.negf %300 : vector<2x32xf32>
    %302 = math.exp %301 : vector<2x32xf32>
    %cst_71 = arith.constant 1.000000e+00 : f32
    %303 = vector.broadcast %cst_71 : f32 to vector<2x32xf32>
    %304 = arith.addf %303, %302 : vector<2x32xf32>
    %305 = arith.divf %303, %304 : vector<2x32xf32>
    %306 = vector.extract_strided_slice %299 {offsets = [0, 32], sizes = [2, 32], strides = [1, 1]} : vector<2x128xf32> to vector<2x32xf32>
    %307 = arith.negf %306 : vector<2x32xf32>
    %308 = math.exp %307 : vector<2x32xf32>
    %cst_72 = arith.constant 1.000000e+00 : f32
    %309 = vector.broadcast %cst_72 : f32 to vector<2x32xf32>
    %310 = arith.addf %309, %308 : vector<2x32xf32>
    %311 = arith.divf %309, %310 : vector<2x32xf32>
    %312 = vector.extract_strided_slice %299 {offsets = [0, 64], sizes = [2, 32], strides = [1, 1]} : vector<2x128xf32> to vector<2x32xf32>
    %313 = math.tanh %312 : vector<2x32xf32>
    %314 = vector.extract_strided_slice %299 {offsets = [0, 96], sizes = [2, 32], strides = [1, 1]} : vector<2x128xf32> to vector<2x32xf32>
    %315 = arith.negf %314 : vector<2x32xf32>
    %316 = math.exp %315 : vector<2x32xf32>
    %cst_73 = arith.constant 1.000000e+00 : f32
    %317 = vector.broadcast %cst_73 : f32 to vector<2x32xf32>
    %318 = arith.addf %317, %316 : vector<2x32xf32>
    %319 = arith.divf %317, %318 : vector<2x32xf32>
    %320 = arith.mulf %311, %293 : vector<2x32xf32>
    %321 = arith.mulf %305, %313 : vector<2x32xf32>
    %322 = arith.addf %320, %321 : vector<2x32xf32>
    %323 = math.tanh %322 : vector<2x32xf32>
    %324 = arith.mulf %319, %323 : vector<2x32xf32>
    %c0_74 = arith.constant 0 : index
    %c288 = arith.constant 288 : index
    %325 = vector.load %arg8[%c0_74, %c288] : memref<2x384xf32, #tpu.memory_space<vmem>>, vector<2x32xf32>
    tpu.vector_store %arg8[%c0_74, %c288], %324 {strides = array<i32>} : memref<2x384xf32, #tpu.memory_space<vmem>>, vector<2x32xf32>,
    %326 = vector.extract_strided_slice %32 {offsets = [20, 0], sizes = [2, 128], strides = [1, 1]} : vector<24x128xf32> to vector<2x128xf32>
    %cst_75 = arith.constant dense<0.000000e+00> : vector<2x128xf32>
    %327 = tpu.matmul %324, %33, %cst_75 {dimension_numbers = #tpu.dot_dimension_numbers<[1], [0], [0], [1], [0, 0, 1, 1], [], []>} : vector<2x32xf32>, vector<32x128xf32>, vector<2x128xf32> -> vector<2x128xf32>
    %328 = arith.addf %326, %327 : vector<2x128xf32>
    %329 = vector.extract_strided_slice %328 {offsets = [0, 0], sizes = [2, 32], strides = [1, 1]} : vector<2x128xf32> to vector<2x32xf32>
    %330 = arith.negf %329 : vector<2x32xf32>
    %331 = math.exp %330 : vector<2x32xf32>
    %cst_76 = arith.constant 1.000000e+00 : f32
    %332 = vector.broadcast %cst_76 : f32 to vector<2x32xf32>
    %333 = arith.addf %332, %331 : vector<2x32xf32>
    %334 = arith.divf %332, %333 : vector<2x32xf32>
    %335 = vector.extract_strided_slice %328 {offsets = [0, 32], sizes = [2, 32], strides = [1, 1]} : vector<2x128xf32> to vector<2x32xf32>
    %336 = arith.negf %335 : vector<2x32xf32>
    %337 = math.exp %336 : vector<2x32xf32>
    %cst_77 = arith.constant 1.000000e+00 : f32
    %338 = vector.broadcast %cst_77 : f32 to vector<2x32xf32>
    %339 = arith.addf %338, %337 : vector<2x32xf32>
    %340 = arith.divf %338, %339 : vector<2x32xf32>
    %341 = vector.extract_strided_slice %328 {offsets = [0, 64], sizes = [2, 32], strides = [1, 1]} : vector<2x128xf32> to vector<2x32xf32>
    %342 = math.tanh %341 : vector<2x32xf32>
    %343 = vector.extract_strided_slice %328 {offsets = [0, 96], sizes = [2, 32], strides = [1, 1]} : vector<2x128xf32> to vector<2x32xf32>
    %344 = arith.negf %343 : vector<2x32xf32>
    %345 = math.exp %344 : vector<2x32xf32>
    %cst_78 = arith.constant 1.000000e+00 : f32
    %346 = vector.broadcast %cst_78 : f32 to vector<2x32xf32>
    %347 = arith.addf %346, %345 : vector<2x32xf32>
    %348 = arith.divf %346, %347 : vector<2x32xf32>
    %349 = arith.mulf %340, %322 : vector<2x32xf32>
    %350 = arith.mulf %334, %342 : vector<2x32xf32>
    %351 = arith.addf %349, %350 : vector<2x32xf32>
    %352 = math.tanh %351 : vector<2x32xf32>
    %353 = arith.mulf %348, %352 : vector<2x32xf32>
    %c0_79 = arith.constant 0 : index
    %c320 = arith.constant 320 : index
    %354 = vector.load %arg8[%c0_79, %c320] : memref<2x384xf32, #tpu.memory_space<vmem>>, vector<2x32xf32>
    tpu.vector_store %arg8[%c0_79, %c320], %353 {strides = array<i32>} : memref<2x384xf32, #tpu.memory_space<vmem>>, vector<2x32xf32>,
    %355 = vector.extract_strided_slice %32 {offsets = [22, 0], sizes = [2, 128], strides = [1, 1]} : vector<24x128xf32> to vector<2x128xf32>
    %cst_80 = arith.constant dense<0.000000e+00> : vector<2x128xf32>
    %356 = tpu.matmul %353, %33, %cst_80 {dimension_numbers = #tpu.dot_dimension_numbers<[1], [0], [0], [1], [0, 0, 1, 1], [], []>} : vector<2x32xf32>, vector<32x128xf32>, vector<2x128xf32> -> vector<2x128xf32>
    %357 = arith.addf %355, %356 : vector<2x128xf32>
    %358 = vector.extract_strided_slice %357 {offsets = [0, 0], sizes = [2, 32], strides = [1, 1]} : vector<2x128xf32> to vector<2x32xf32>
    %359 = arith.negf %358 : vector<2x32xf32>
    %360 = math.exp %359 : vector<2x32xf32>
    %cst_81 = arith.constant 1.000000e+00 : f32
    %361 = vector.broadcast %cst_81 : f32 to vector<2x32xf32>
    %362 = arith.addf %361, %360 : vector<2x32xf32>
    %363 = arith.divf %361, %362 : vector<2x32xf32>
    %364 = vector.extract_strided_slice %357 {offsets = [0, 32], sizes = [2, 32], strides = [1, 1]} : vector<2x128xf32> to vector<2x32xf32>
    %365 = arith.negf %364 : vector<2x32xf32>
    %366 = math.exp %365 : vector<2x32xf32>
    %cst_82 = arith.constant 1.000000e+00 : f32
    %367 = vector.broadcast %cst_82 : f32 to vector<2x32xf32>
    %368 = arith.addf %367, %366 : vector<2x32xf32>
    %369 = arith.divf %367, %368 : vector<2x32xf32>
    %370 = vector.extract_strided_slice %357 {offsets = [0, 64], sizes = [2, 32], strides = [1, 1]} : vector<2x128xf32> to vector<2x32xf32>
    %371 = math.tanh %370 : vector<2x32xf32>
    %372 = vector.extract_strided_slice %357 {offsets = [0, 96], sizes = [2, 32], strides = [1, 1]} : vector<2x128xf32> to vector<2x32xf32>
    %373 = arith.negf %372 : vector<2x32xf32>
    %374 = math.exp %373 : vector<2x32xf32>
    %cst_83 = arith.constant 1.000000e+00 : f32
    %375 = vector.broadcast %cst_83 : f32 to vector<2x32xf32>
    %376 = arith.addf %375, %374 : vector<2x32xf32>
    %377 = arith.divf %375, %376 : vector<2x32xf32>
    %378 = arith.mulf %369, %351 : vector<2x32xf32>
    %379 = arith.mulf %363, %371 : vector<2x32xf32>
    %380 = arith.addf %378, %379 : vector<2x32xf32>
    %381 = math.tanh %380 : vector<2x32xf32>
    %382 = arith.mulf %377, %381 : vector<2x32xf32>
    %c0_84 = arith.constant 0 : index
    %c352 = arith.constant 352 : index
    %383 = vector.load %arg8[%c0_84, %c352] : memref<2x384xf32, #tpu.memory_space<vmem>>, vector<2x32xf32>
    tpu.vector_store %arg8[%c0_84, %c352], %382 {strides = array<i32>} : memref<2x384xf32, #tpu.memory_space<vmem>>, vector<2x32xf32>,
    return
  }
}

</mosaic_0001>

<bundles_post_ra>
// kernel: tpu_custom_call.1
= control target key start
LH: loop header
LB: loop body
LE: loop exit
PB: predicated region body
PF: predicated region fallthrough
CT: control target
= control target key end

     0   :  { %s3805_s0 = inlined_call_operand.vmem [shape: f32[128,24], index: 0, kind: input, shape index: {}]   ;;  %s3806_s1 = inlined_call_operand.vmem [shape: f32[160,128], index: 1, kind: input, shape index: {}]   ;;  %s3807_s2 = inlined_call_operand.vmem [shape: f32[160,1], index: 2, kind: input, shape index: {}]   ;;  %s3808_s3 = inlined_call_operand.<no memory space> [shape: f32[1,1], index: 3, kind: input, shape index: {}]   ;;  %s3809_s4 = inlined_call_operand.vmem [shape: f32[128,128], index: 4, kind: input, shape index: {}]   ;;  %s3810_s5 = inlined_call_operand.vmem [shape: f32[1,128], index: 5, kind: input, shape index: {}]   ;;  %s3811_s6 = inlined_call_operand.vmem [shape: f32[32,128], index: 6, kind: input, shape index: {}]   ;;  %s3812_s7 = inlined_call_operand.hbm [shape: f32[24,24], index: 7, kind: input, shape index: {}]   ;;  %s3813_s8 = inlined_call_operand.hbm [shape: f32[2,384], index: 8, kind: output, shape index: {}]  }
   0x1   :  { %v13_v0 = vstv %s3808_s3 }
   0x2   :  { %14 = vst [vmem:[#allocation2] sm:$0x1] %v13_v0 }
   0x3   :  { %15 = vsyncpa [#allocation4], 0 }
   0x4   :  { %16 = vsyncpa [#allocation5], 0  ;;  %s3099_s29 = smov [#allocation3]   ;;  %s3051_s11 = scalar_lea.hbm %s3812_s7, 384 }
   0x5   :  { %s36_s30 = sshll.u32 %s3099_s29, 4  ;;  %p3052_p0 = scmp.ne.s32.totalorder %s3812_s7, %s3051_s11  ;;  %s37_s30 = int_to_ptr.vmem [resolvable:$true] %s36_s30 }
   0x6   :  { %p3055_p1 = scmp.lt.u32.totalorder %s3051_s11, %s3812_s7 }
   0x8   :  { %p3057_p2 = pnand %p3055_p1, %p3052_p0 }
   0xa   :  { %3060 = shalt.err (!%p3057_p2)
}
   0xb   :  { %s3061_s3 = scalar_lea.vmem %s37_s30, 384  ;;  %p3066_p4 = scmp.lt.s32.totalorder %s37_s30, %s37_s30 }
   0xc   :  { %p3062_p3 = scmp.ne.s32.totalorder %s37_s30, %s3061_s3  ;;  %p3067_p5 = scmp.lt.s32.totalorder %s3061_s3, %s3061_s3 }
   0xe   :  { %p3068_p6 = por %p3067_p5, %p3066_p4 }
  0x10   :  { %p3069_p7 = pnand %p3068_p6, %p3062_p3 }
  0x12   :  { %3072 = shalt.err (!%p3069_p7)
}
  0x13   :  { %s3100_s16 = smov 128   ;;  %s3101_s17 = smov 8  }
  0x14   :  { %42 = dma.hbm_to_vmem [thread:$0]  %s3812_s7, 384, %s37_s30, [#allocation4], %s3100_s16, %s3100_s16, %s3101_s17  }
  0x15   :  { %3095 = dma.done.wait [#allocation4], 384  }
  0x16   :  { %3096 = vsyncadd [#allocation4], 4294966912  ;;  %v3102_v1 = vmov 0   ;;  %v3174_v2 = vld [vmem:[%s3805_s0] sm:$0xff]  ;;  %v3179_v3 = vld [vmem:[%s3805_s0 + $0x8] sm:$0xff]  ;;  %v3103_v34 = vmov 0.0|0.0  }
  0x17   :  { %2941 = vset.pattern.permute.xlu0 %v3102_v1  ;;  %2942 = vset.pattern.permute.xlu1 %v3102_v1  ;;  %v3184_v4 = vld [vmem:[%s3805_s0 + $0x10] sm:$0xff]  ;;  %v2790_v5 = vpack.c.bf16 %v3179_v3, %v3174_v2  ;;  %v3191_v6 = vld [vmem:[%s3805_s0 + $0x18] sm:$0xff]  ;;  %v3198_v8 = vld [vmem:[%s3805_s0 + $0x20] sm:$0xff]  ;;  %vm3104_vm0 = vmmov 0   ;;  %v3105_v35 = vmov 0.0   ;;  %vm402_vm1 = vcmask 130048  }
  0x18   :  { %v2794_v7 = vpack.c.bf16 %v3191_v6, %v3184_v4  ;;  %v3203_v9 = vld [vmem:[%s3805_s0 + $0x28] sm:$0xff]  ;;  %v46_v11 = vld [vmem:[%s3806_s1] sm:$0xff]  ;;  %v3213_v12 = vld [vmem:[%s3805_s0 + $0x30] sm:$0xff]  ;;  %2822 = vmatprep.subr.bf16.mxu1 %v3103_v34  ;;  %2578 = vmatprep.mubr.msk.f32.mxu1 %vm3104_vm0, %v3105_v35  ;;  %vm492_vm2 = vcmask 195584   ;;  %s3106_s19 = smov 64   ;;  %vm902_vm4 = vcmask 261120  }
  0x19   :  { %2791 = vmatprep.subr.bf16.mxu0 %v2790_v5  ;;  %v2798_v10 = vpack.c.bf16 %v3203_v9, %v3198_v8  ;;  %v3218_v13 = vld [vmem:[%s3805_s0 + $0x38] sm:$0xff]  ;;  %2544 = vmatprep.mubr.f32.mxu0 %v46_v11  ;;  %v82_v14 = vld [vmem:[%s3807_s2] sm:$0xff]  ;;  %v84_v15 = vld [vmem:[%s3807_s2 + $0x10] sm:$0xff]  ;;  %vm1012_vm5 = vcmask 254976   ;;  %s3109_s20 = smov 96   ;;  %vm1131_vm6 = vcmask 517376  }
  0x1a   :  { %2793 = vmatpush3.bf16.msra.mxu0 %v2790_v5  ;;  %104 = vperm.xlu0 %2941, %v82_v14   ;;  %v83_v16 = vld [vmem:[%s3807_s2 + $0x8] sm:$0xff]  ;;  %v2802_v17 = vpack.c.bf16 %v3218_v13, %v3213_v12  ;;  %v85_v18 = vld [vmem:[%s3807_s2 + $0x18] sm:$0xff]  ;;  %v3237_v19 = vld [vmem:[%s3805_s0 + $0x40] sm:$0xff]  ;;  %vm1251_vm7 = vcmask 779776   ;;  %vm1370_vm8 = vcmask 1042176   ;;  %s3110_s21 = smov [#allocation6]  }
  0x1b   :  { %2795 = vmatprep.subr.bf16.mxu0 %v2794_v7  ;;  %114 = vperm.xlu1 %2942, %v84_v15   ;;  %v3242_v20 = vld [vmem:[%s3805_s0 + $0x48] sm:$0xff]  ;;  %v3249_v22 = vld [vmem:[%s3805_s0 + $0x50] sm:$0xff]  ;;  %v3254_v23 = vld [vmem:[%s3805_s0 + $0x58] sm:$0xff]  ;;  %s2318_s22 = sshll.u32 %s3110_s21, 4  ;;  %s2319_s22 = int_to_ptr.vmem [resolvable:$true] %s2318_s22 }
  0x1c   :  { %v2806_v21 = vpack.c.bf16 %v3242_v20, %v3237_v19  ;;  %v2810_v24 = vpack.c.bf16 %v3254_v23, %v3249_v22  ;;  %v3261_v25 = vld [vmem:[%s3805_s0 + $0x60] sm:$0xff]  ;;  %v3266_v26 = vld [vmem:[%s3805_s0 + $0x68] sm:$0xff]  ;;  %v3273_v28 = vld [vmem:[%s3805_s0 + $0x70] sm:$0xff]  ;;  %s3073_s23 = scalar_lea.vmem %s2319_s22, 96  ;;  %p3078_p9 = scmp.lt.s32.totalorder %s2319_s22, %s2319_s22 }
  0x1d   :  { %v2814_v27 = vpack.c.bf16 %v3266_v26, %v3261_v25  ;;  %v3278_v29 = vld [vmem:[%s3805_s0 + $0x78] sm:$0xff]  ;;  %v47_v31 = vld [vmem:[%s3806_s1 + $0x8] sm:$0xff]  ;;  %v48_v32 = vld [vmem:[%s3806_s1 + $0x10] sm:$0xff]  ;;  %p3074_p8 = scmp.ne.s32.totalorder %s2319_s22, %s3073_s23  ;;  %p3079_p10 = scmp.lt.s32.totalorder %s3073_s23, %s3073_s23 }
  0x1e   :  { %2797 = vmatpush3.bf16.msra.mxu0 %v2794_v7  ;;  %109 = vperm.xlu0 %2941, %v83_v16   ;;  %v2818_v30 = vpack.c.bf16 %v3278_v29, %v3273_v28  ;;  %v49_v33 = vld [vmem:[%s3806_s1 + $0x18] sm:$0xff]  ;;  %v50_v49 = vld [vmem:[%s3806_s1 + $0x20] sm:$0xff]  ;;  %v51_v50 = vld [vmem:[%s3806_s1 + $0x28] sm:$0xff] }
  0x1f   :  { %2799 = vmatprep.subr.bf16.mxu0 %v2798_v10  ;;  %119 = vperm.xlu1 %2942, %v85_v18   ;;  %v52_v51 = vld [vmem:[%s3806_s1 + $0x30] sm:$0xff]  ;;  %v53_v52 = vld [vmem:[%s3806_s1 + $0x38] sm:$0xff]  ;;  %v54_v53 = vld [vmem:[%s3806_s1 + $0x40] sm:$0xff]  ;;  %p3080_p11 = por %p3079_p10, %p3078_p9 }
  0x20   :  { %v55_v54 = vld [vmem:[%s3806_s1 + $0x48] sm:$0xff]  ;;  %v56_v55 = vld [vmem:[%s3806_s1 + $0x50] sm:$0xff]  ;;  %v57_v56 = vld [vmem:[%s3806_s1 + $0x58] sm:$0xff] }
  0x21   :  { %v58_v57 = vld [vmem:[%s3806_s1 + $0x60] sm:$0xff]  ;;  %v59_v58 = vld [vmem:[%s3806_s1 + $0x68] sm:$0xff]  ;;  %v60_v59 = vld [vmem:[%s3806_s1 + $0x70] sm:$0xff]  ;;  %p3081_p12 = pnand %p3080_p11, %p3074_p8 }
  0x22   :  { %2801 = vmatpush3.bf16.msra.mxu0 %v2798_v10  ;;  %v61_v60 = vld [vmem:[%s3806_s1 + $0x78] sm:$0xff]  ;;  %v62_v61 = vld [vmem:[%s3806_s1 + $0x80] sm:$0xff]  ;;  %v63_v62 = vld [vmem:[%s3806_s1 + $0x88] sm:$0xff] }
  0x23   :  { %2803 = vmatprep.subr.bf16.mxu0 %v2802_v17  ;;  %v64_v63 = vld [vmem:[%s3806_s1 + $0x90] sm:$0xff]  ;;  %v65_v0 = vld [vmem:[%s3806_s1 + $0x98] sm:$0xff]  ;;  %v367_v10 = vld [vmem:[#allocation3] sm:$0xff] }
  0x24   :  { %v368_v16 = vld [vmem:[#allocation3 + $0x8] sm:$0xff]  ;;  %vm2826_vm3 = vmpackc.low %vm492_vm2, %vm492_vm2 }
  0x26   :  { %2805 = vmatpush3.bf16.msra.mxu0 %v2802_v17 }
  0x27   :  { %2807 = vmatprep.subr.bf16.mxu0 %v2806_v21 }
  0x2a   :  { %2809 = vmatpush3.bf16.msra.mxu0 %v2806_v21 }
  0x2b   :  { %2811 = vmatprep.subr.bf16.mxu0 %v2810_v24 }
  0x2e   :  { %2813 = vmatpush3.bf16.msra.mxu0 %v2810_v24 }
  0x2f   :  { %2815 = vmatprep.subr.bf16.mxu0 %v2814_v27 }
  0x32   :  { %2817 = vmatpush3.bf16.msra.mxu0 %v2814_v27 }
  0x33   :  { %2819 = vmatprep.subr.bf16.mxu0 %v2818_v30 }
  0x36   :  { %2821 = vmatpush3.bf16.msra.mxu0 %v2818_v30 }
  0x37   :  { %2867 = vmatprep.subr.bf16.mxu0 %v3103_v34 }
  0x39   :  { %2545 = vmatmul.mubr.f32.vlgmr.msra.gmra.mrb[0].mxu0 %v47_v31 }
  0x3a   :  { %2547 = vmatprep.mubr.f32.mxu0 %v48_v32  ;;  %v86_v32 = vld [vmem:[%s3807_s2 + $0x20] sm:$0xff] }
  0x3d   :  { %2548 = vmatmul.mubr.f32.gmra.mrb[2].mxu0 %v49_v33 }
  0x3e   :  { %2550 = vmatprep.mubr.f32.mxu0 %v50_v49 }
  0x41   :  { %2551 = vmatmul.mubr.f32.gmra.mrb[4].mxu0 %v51_v50 }
  0x42   :  { %2553 = vmatprep.mubr.f32.mxu0 %v52_v51  ;;  %v90_v51 = vld [vmem:[%s3807_s2 + $0x40] sm:$0xff] }
  0x45   :  { %2554 = vmatmul.mubr.f32.gmra.mrb[6].mxu0 %v53_v52 }
  0x46   :  { %2556 = vmatprep.mubr.f32.mxu0 %v54_v53  ;;  %v99_v53 = vld [vmem:[%s3807_s2 + $0x88] sm:$0xff] }
  0x49   :  { %2557 = vmatmul.mubr.f32.gmra.mrb[8].mxu0 %v55_v54 }
  0x4a   :  { %2559 = vmatprep.mubr.f32.mxu0 %v56_v55 }
  0x4d   :  { %2560 = vmatmul.mubr.f32.gmra.mrb[10].mxu0 %v57_v56  ;;  %v101_v56 = vld [vmem:[%s3807_s2 + $0x98] sm:$0xff] }
  0x4e   :  { %2562 = vmatprep.mubr.f32.mxu0 %v58_v57 }
  0x51   :  { %2563 = vmatmul.mubr.f32.gmra.mrb[12].mxu0 %v59_v58  ;;  %v369_v58 = vld [vmem:[#allocation3 + $0x10] sm:$0xff] }
  0x52   :  { %2565 = vmatprep.mubr.f32.mxu0 %v60_v59 }
  0x55   :  { %2566 = vmatmul.mubr.f32.gmra.mrb[14].mxu0 %v61_v60 }
  0x56   :  { %2568 = vmatprep.mubr.f32.mxu0 %v62_v61  ;;  %v92_v61 = vld [vmem:[%s3807_s2 + $0x50] sm:$0xff] }
  0x59   :  { %2569 = vmatmul.mubr.f32.gmra.mrb[16].mxu0 %v63_v62 }
  0x5a   :  { %2571 = vmatprep.mubr.f32.mxu0 %v64_v63 }
  0x5d   :  { %2572 = vmatmul.mubr.f32.gmra.mrb[18].mxu0 %v65_v0 }
  0x5e   :  { %2688 = vmatprep.mubr.msk.f32.mxu0 %vm3104_vm0, %v3105_v35 }
  0x99   :  { %v105_v37 = vpop.permute.xlu0 %104 }
  0x9a   :  { %v115_v36 = vpop.permute.xlu1 %114 }
  0x9d   :  { %v110_v42 = vpop.permute.xlu0 %109 }
  0x9e   :  { %v120_v41 = vpop.permute.xlu1 %119 }
 0x10c   :  { %v2546_v38 = vpop.f32.mrb[0].mxu0 }
 0x10d   :  { %v268_v39 = vpop.f32.mrb[1].mxu0  ;;  %v274_v46 = vadd.f32 %v2546_v38, %v110_v42 }
 0x10e   :  { %v269_v40 = vadd.f32 %v268_v39, %v105_v37  ;;  %v87_v37 = vld [vmem:[%s3807_s2 + $0x28] sm:$0xff]  ;;  %v88_v39 = vld [vmem:[%s3807_s2 + $0x30] sm:$0xff] }
 0x110   :  { %370 = vxpose.xlu0.b32.start [1/2] (short) (narrow) %v269_v40, 24  ;;  %v2549_v43 = vpop.f32.mrb[2].mxu0 }
 0x111   :  { %v284_v44 = vadd.f32 %v2549_v43, %v120_v41  ;;  %v278_v45 = vpop.f32.mrb[3].mxu0  ;;  %v91_v41 = vld [vmem:[%s3807_s2 + $0x48] sm:$0xff] }
 0x112   :  { %v279_v47 = vadd.f32 %v278_v45, %v115_v36  ;;  %v89_v45 = vld [vmem:[%s3807_s2 + $0x38] sm:$0xff] }
 0x114   :  { %371 = vxpose.xlu0.b32.end [2/2] (short) (narrow) %v274_v46, 24  ;;  %v2823_v48 = vpack.c.bf16 %v284_v44, %v279_v47  ;;  %v2552_v33 = vpop.f32.mrb[4].mxu0  ;;  %v97_v47 = vld [vmem:[%s3807_s2 + $0x78] sm:$0xff] }
 0x115   :  { %v288_v36 = vpop.f32.mrb[5].mxu0 }
 0x116   :  { %2824 = vmatpush3.bf16.msra.mxu1 %v2823_v48 }
 0x118   :  { %v2555_v38 = vpop.f32.mrb[6].mxu0 }
 0x119   :  { %v298_v40 = vpop.f32.mrb[7].mxu0 }
 0x11c   :  { %v3363_v42 = vpop.f32.mrb[8].mxu0 }
 0x11d   :  { %v308_v43 = vpop.f32.mrb[9].mxu0 }
 0x120   :  { %v3365_v44 = vpop.f32.mrb[10].mxu0 }
 0x121   :  { %v3370_v46 = vpop.f32.mrb[11].mxu0 }
 0x124   :  { %v3375_v48 = vpop.f32.mrb[12].mxu0 }
 0x125   :  { %v3377_v49 = vpop.f32.mrb[13].mxu0 }
 0x128   :  { %v3379_v50 = vpop.f32.mrb[14].mxu0 }
 0x129   :  { %v3384_v52 = vpop.f32.mrb[15].mxu0 }
 0x12c   :  { %v3389_v54 = vpop.f32.mrb[16].mxu0 }
 0x12d   :  { %v3391_v55 = vpop.f32.mrb[17].mxu0 }
 0x130   :  { %v3396_v57 = vpop.f32.mrb[18].mxu0 }
 0x190   :  { %v386_v1 = vpop.trf.xlu0 }
 0x191   :  { %2579 = vmatmul.mubr.msk.f32.vlgmr.msra.gmra.mrb[0].mxu1 %vm402_vm1, %v386_v1 }
 0x192   :  { %2581 = vmatprep.mubr.msk.f32.mxu1 %vm3104_vm0, %v3105_v35 }
 0x194   :  { %v387_v5 = vpop.trf.xlu0 }
 0x195   :  { %2582 = vmatmul.mubr.msk.f32.gmra.mrb[2].mxu1 %vm402_vm1, %v387_v5 }
 0x196   :  { %2584 = vmatprep.mubr.msk.f32.mxu1 %vm3104_vm0, %v3105_v35 }
 0x198   :  { %v388_v7 = vpop.trf.xlu0 }
 0x199   :  { %2585 = vmatmul.mubr.msk.f32.gmra.mrb[4].mxu1 %vm402_vm1, %v388_v7 }
 0x264   :  { %v478_v11 = vpop.f32.mrb[0].mxu1 }
 0x265   :  { %v479_v14 = vadd.f32 %v478_v11, %v367_v10  ;;  %v2580_v15 = vpop.f32.mrb[1].mxu1 }
 0x267   :  { %v493_v17 = vsel %vm492_vm2, %v479_v14, -inf }
 0x268   :  { %494 = vmax.xlane.f32.xlu1 %v493_v17  ;;  %v483_v18 = vpop.f32.mrb[2].mxu1 }
 0x269   :  { %v484_v21 = vadd.f32 %v483_v18, %v368_v16  ;;  %v2583_v24 = vpop.f32.mrb[3].mxu1 }
 0x26b   :  { %v496_v27 = vsel %vm492_vm2, %v484_v21, -inf }
 0x26c   :  { %497 = vmax.xlane.f32.xlu0 %v496_v27  ;;  %v488_v30 = vpop.f32.mrb[4].mxu1 }
 0x26d   :  { %v2586_v31 = vpop.f32.mrb[5].mxu1  ;;  %v489_v59 = vadd.f32 %v488_v30, %v369_v58  ;;  %v728_v58 = vld [vmem:[#allocation2] sm:$0x1] }
 0x26e   :  { %2927 = vpush %v728_v58  ;;  %v772_v58 = vld [vmem:[%s3809_s4 + $0x48] sm:$0xff] }
 0x26f   :  { %v499_v60 = vsel %vm492_vm2, %v489_v59, -inf }
 0x279   :  { %124 = vperm.xlu1 %2942, %v86_v32  }
 0x27d   :  { %129 = vperm.xlu1 %2942, %v87_v37  }
 0x281   :  { %134 = vperm.xlu1 %2942, %v88_v39  }
 0x282   :  { %149 = vperm.xlu0 %2941, %v91_v41  }
 0x285   :  { %139 = vperm.xlu1 %2942, %v89_v45  }
 0x286   :  { %179 = vperm.xlu0 %2941, %v97_v47   ;;  %v96_v47 = vld [vmem:[%s3807_s2 + $0x70] sm:$0xff] }
 0x289   :  { %144 = vperm.xlu1 %2942, %v90_v51   ;;  %v98_v51 = vld [vmem:[%s3807_s2 + $0x80] sm:$0xff] }
 0x28a   :  { %189 = vperm.xlu0 %2941, %v99_v53   ;;  %v100_v53 = vld [vmem:[%s3807_s2 + $0x90] sm:$0xff] }
 0x28e   :  { %199 = vperm.xlu0 %2941, %v101_v56   ;;  %v358_v56 = vpop.f32.mrb[19].mxu0 }
 0x29f   :  { %s2928_s12 = spop %2927 }
 0x2ad   :  { %500 = vmax.xlane.f32.xlu1 %v499_v60 }
 0x2be   :  { %154 = vperm.xlu1 %2942, %v92_v61  }
 0x2f5   :  { %v495_v62 = vpop.xlane.xlu1 %494 }
 0x2f6   :  { %v502_v63 = vsub.f32 %v479_v14, %v495_v62 }
 0x2f8   :  { %v505_v0 = vmul.f32 1.442695, %v502_v63 }
 0x2f9   :  { %v125_v1 = vpop.permute.xlu1 %124  ;;  %v498_v5 = vpop.xlane.xlu0 %497 }
 0x2fa   :  { %2943 = vpow2.f32 %v505_v0  ;;  %v289_v7 = vadd.f32 %v288_v36, %v125_v1  ;;  %v503_v10 = vsub.f32 %v484_v21, %v498_v5  ;;  %v93_v21 = vld [vmem:[%s3807_s2 + $0x58] sm:$0xff] }
 0x2fc   :  { %v507_v11 = vmul.f32 1.442695, %v503_v10  ;;  %2593 = vmatprep.mubr.msk.f32.mxu1 %vm492_vm2, %v289_v7 }
 0x2fd   :  { %v130_v15 = vpop.permute.xlu1 %129 }
 0x2fe   :  { %2945 = vpow2.f32 %v507_v11  ;;  %v294_v16 = vadd.f32 %v2552_v33, %v130_v15 }
 0x301   :  { %v135_v17 = vpop.permute.xlu1 %134 }
 0x302   :  { %v299_v18 = vadd.f32 %v298_v40, %v135_v17 }
 0x304   :  { %v2944_v24 = vpop.eup %2943 }
 0x305   :  { %v140_v27 = vpop.permute.xlu1 %139  ;;  %v511_v30 = vsel %vm492_vm2, %v2944_v24, 0.0 }
 0x306   :  { %v304_v31 = vadd.f32 %v2555_v38, %v140_v27  ;;  %512 = vadd.xlane.f32.xlu1 %v511_v30  ;;  %v94_v38 = vld [vmem:[%s3807_s2 + $0x60] sm:$0xff]  ;;  %v150_v27 = vpop.permute.xlu0 %149 }
 0x307   :  { %v314_v30 = vadd.f32 %v3363_v42, %v150_v27 }
 0x308   :  { %v2946_v14 = vpop.eup %2945 }
 0x309   :  { %v145_v32 = vpop.permute.xlu1 %144  ;;  %v514_v37 = vsel %vm492_vm2, %v2946_v14, 0.0 }
 0x30a   :  { %v309_v36 = vadd.f32 %v308_v43, %v145_v32  ;;  %515 = vadd.xlane.f32.xlu1 %v514_v37  ;;  %v95_v43 = vld [vmem:[%s3807_s2 + $0x68] sm:$0xff] }
 0x31b   :  { %159 = vperm.xlu1 %2942, %v93_v21  }
 0x33a   :  { %v501_v33 = vpop.xlane.xlu1 %500 }
 0x33b   :  { %v504_v39 = vsub.f32 %v489_v59, %v501_v33 }
 0x33d   :  { %v509_v40 = vmul.f32 1.442695, %v504_v39 }
 0x33e   :  { %v155_v59 = vpop.permute.xlu1 %154 }
 0x33f   :  { %2947 = vpow2.f32 %v509_v40 }
 0x349   :  { %v2948_v41 = vpop.eup %2947 }
 0x34a   :  { %v517_v45 = vsel %vm492_vm2, %v2948_v41, 0.0 }
 0x34b   :  { %518 = vadd.xlane.f32.xlu1 %v517_v45  ;;  %v767_v45 = vld [vmem:[%s3809_s4 + $0x20] sm:$0xff] }
 0x35c   :  { %164 = vperm.xlu1 %2942, %v94_v38   ;;  %v768_v38 = vld [vmem:[%s3809_s4 + $0x28] sm:$0xff] }
 0x360   :  { %169 = vperm.xlu1 %2942, %v95_v43   ;;  %v2838_v43 = vpack.c.bf16 %v768_v38, %v767_v45 }
 0x364   :  { %174 = vperm.xlu1 %2942, %v96_v47   ;;  %v769_v47 = vld [vmem:[%s3809_s4 + $0x30] sm:$0xff] }
 0x368   :  { %184 = vperm.xlu1 %2942, %v98_v51   ;;  %v770_v51 = vld [vmem:[%s3809_s4 + $0x38] sm:$0xff] }
 0x36c   :  { %194 = vperm.xlu1 %2942, %v100_v53   ;;  %v2841_v53 = vpack.c.bf16 %v770_v51, %v769_v47 }
 0x393   :  { %v513_v60 = vpop.xlane.xlu1 %512 }
 0x394   :  { %2949 = vrcp.f32 %v513_v60  ;;  %v773_v60 = vld [vmem:[%s3809_s4 + $0x50] sm:$0xff] }
 0x397   :  { %v516_v61 = vpop.xlane.xlu1 %515 }
 0x398   :  { %2951 = vrcp.f32 %v516_v61  ;;  %v774_v61 = vld [vmem:[%s3809_s4 + $0x58] sm:$0xff] }
 0x39b   :  { %v160_v7 = vpop.permute.xlu1 %159 }
 0x39c   :  { %v324_v37 = vadd.f32 %v3365_v44, %v160_v7  ;;  %v778_v7 = vld [vmem:[%s3809_s4 + $0x78] sm:$0xff] }
 0x39e   :  { %v2950_v62 = vpop.eup %2949 }
 0x39f   :  { %v521_v0 = vmul.f32 %v2950_v62, %v2944_v24  ;;  %v2847_v62 = vpack.c.bf16 %v774_v61, %v773_v60 }
 0x3a2   :  { %v2952_v63 = vpop.eup %2951 }
 0x3a3   :  { %v523_v1 = vmul.f32 %v2952_v63, %v2946_v14  ;;  %v319_v14 = vadd.f32 %v3370_v46, %v155_v59  ;;  %v775_v63 = vld [vmem:[%s3809_s4 + $0x60] sm:$0xff] }
 0x3a5   :  { %v2825_v5 = vpack.c.bf16 %v523_v1, %v521_v0  ;;  %v776_v0 = vld [vmem:[%s3809_s4 + $0x68] sm:$0xff] }
 0x3a6   :  { %v2850_v1 = vpack.c.bf16 %v776_v0, %v775_v63 }
 0x3a7   :  { %2827 = vmatprep.subr.msk.bf16.mxu1 %vm2826_vm3, %v2825_v5 }
 0x3a8   :  { %2830 = vmatpush3.bf16.xpose.msk.msra.mxu1 %vm2826_vm3, %v2825_v5  ;;  %v777_v5 = vld [vmem:[%s3809_s4 + $0x70] sm:$0xff] }
 0x3d8   :  { %v519_v10 = vpop.xlane.xlu1 %518 }
 0x3d9   :  { %2953 = vrcp.f32 %v519_v10  ;;  %v2853_v10 = vpack.c.bf16 %v778_v7, %v777_v5  ;;  %v2349_v7 = vld [vmem:[%s3810_s5] ss:$0 sm:$0xff]  ;;  %s3107_s5 = smov 32  }
 0x3dc   :  { %v165_v17 = vpop.permute.xlu1 %164 }
 0x3e0   :  { %v170_v24 = vpop.permute.xlu1 %169 }
 0x3e3   :  { %v2954_v11 = vpop.eup %2953 }
 0x3e4   :  { %v525_v15 = vmul.f32 %v2954_v11, %v2948_v41  ;;  %v175_v32 = vpop.permute.xlu1 %174  ;;  %v3512_v11 = vstv %s2928_s12 }
 0x3e5   :  { %v339_v42 = vadd.f32 %v3384_v52, %v175_v32 }
 0x3e6   :  { %2591 = vmatprep.subr.msk.mxu1 %vm492_vm2, %v525_v15 }
 0x3e7   :  { %2592 = vmatpush3.xpose.msk.msra.mxu1 %vm492_vm2, %v525_v15 }
 0x3e8   :  { %2831 = vmatprep.subr.bf16.mxu1 %v3103_v34 }
 0x3ea   :  { %2594 = vmatmul.mubr.msk.f32.vlgmr.msra.gmra.mrb[6].mxu1 %vm492_vm2, %v294_v16  ;;  %v180_v16 = vpop.permute.xlu0 %179 }
 0x3eb   :  { %2596 = vmatprep.mubr.msk.f32.mxu1 %vm492_vm2, %v299_v18  ;;  %v329_v18 = vadd.f32 %v3377_v49, %v165_v17  ;;  %v344_v21 = vadd.f32 %v3379_v50, %v180_v16  ;;  %v763_v50 = vld [vmem:[%s3809_s4] sm:$0xff] }
 0x3ee   :  { %2597 = vmatmul.mubr.msk.f32.gmra.mrb[8].mxu1 %vm492_vm2, %v304_v31  ;;  %v334_v31 = vadd.f32 %v3375_v48, %v170_v24  ;;  %v190_v46 = vpop.permute.xlu0 %189 }
 0x3ef   :  { %2599 = vmatprep.mubr.msk.f32.mxu1 %vm492_vm2, %v309_v36  ;;  %v185_v36 = vpop.permute.xlu1 %184  ;;  %v354_v49 = vadd.f32 %v3389_v54, %v190_v46  ;;  %v764_v54 = vld [vmem:[%s3809_s4 + $0x8] sm:$0xff] }
 0x3f0   :  { %v349_v44 = vadd.f32 %v3391_v55, %v185_v36  ;;  %v765_v55 = vld [vmem:[%s3809_s4 + $0x10] sm:$0xff]  ;;  %v2832_v40 = vpack.c.bf16 %v764_v54, %v763_v50  ;;  %v899_v36 = vld [vmem:[%s3811_s6 + $0x8] sm:$0xff] }
 0x3f2   :  { %2600 = vmatmul.mubr.msk.f32.gmra.mrb[10].mxu1 %vm492_vm2, %v314_v30  ;;  %v200_v48 = vpop.permute.xlu0 %199 }
 0x3f3   :  { %2602 = vmatprep.mubr.msk.f32.mxu1 %vm492_vm2, %v319_v14  ;;  %v195_v33 = vpop.permute.xlu1 %194  ;;  %v364_v52 = vadd.f32 %v3396_v57, %v200_v48  ;;  %v766_v57 = vld [vmem:[%s3809_s4 + $0x18] sm:$0xff]  ;;  %2833 = vmatpush3.bf16.msra.mxu1 %v2832_v40 }
 0x3f4   :  { %v359_v39 = vadd.f32 %v358_v56, %v195_v33  ;;  %v2835_v41 = vpack.c.bf16 %v766_v57, %v765_v55  ;;  %2834 = vmatprep.subr.bf16.mxu1 %v3103_v34  ;;  %v771_v56 = vld [vmem:[%s3809_s4 + $0x40] sm:$0xff]  ;;  %v900_v33 = vld [vmem:[%s3811_s6 + $0x10] sm:$0xff] }
 0x3f5   :  { %v2844_v59 = vpack.c.bf16 %v772_v58, %v771_v56 }
 0x3f6   :  { %2603 = vmatmul.mubr.msk.f32.gmra.mrb[12].mxu1 %vm492_vm2, %v324_v37 }
 0x3f7   :  { %2605 = vmatprep.mubr.msk.f32.mxu1 %vm492_vm2, %v329_v18  ;;  %2836 = vmatpush3.bf16.msra.mxu1 %v2835_v41 }
 0x3f8   :  { %2837 = vmatprep.subr.bf16.mxu1 %v3103_v34 }
 0x3fa   :  { %2606 = vmatmul.mubr.msk.f32.gmra.mrb[14].mxu1 %vm492_vm2, %v334_v31  ;;  %v898_v31 = vld [vmem:[%s3811_s6] sm:$0xff] }
 0x3fb   :  { %2608 = vmatprep.mubr.msk.f32.mxu1 %vm492_vm2, %v339_v42  ;;  %2839 = vmatpush3.bf16.msra.mxu1 %v2838_v43  ;;  %v3525_v46 = vpack.c.bf16 %v899_v36, %v898_v31 }
 0x3fc   :  { %2840 = vmatprep.subr.bf16.mxu1 %v3103_v34 }
 0x3fd   :  { %2869 = vmatpush3.bf16.msra.mxu0 %v3525_v46 }
 0x3fe   :  { %2609 = vmatmul.mubr.msk.f32.gmra.mrb[16].mxu1 %vm492_vm2, %v344_v21  ;;  %2870 = vmatprep.subr.bf16.mxu0 %v3103_v34 }
 0x3ff   :  { %2611 = vmatprep.mubr.msk.f32.mxu1 %vm492_vm2, %v349_v44  ;;  %2842 = vmatpush3.bf16.msra.mxu1 %v2841_v53 }
 0x400   :  { %2843 = vmatprep.subr.bf16.mxu1 %v3103_v34 }
 0x402   :  { %2612 = vmatmul.mubr.msk.f32.gmra.mrb[18].mxu1 %vm492_vm2, %v354_v49  ;;  %v901_v49 = vld [vmem:[%s3811_s6 + $0x18] sm:$0xff] }
 0x403   :  { %2614 = vmatprep.mubr.msk.f32.mxu1 %vm492_vm2, %v359_v39  ;;  %2845 = vmatpush3.bf16.msra.mxu1 %v2844_v59  ;;  %v3537_v48 = vpack.c.bf16 %v901_v49, %v900_v33 }
 0x404   :  { %2846 = vmatprep.subr.bf16.mxu1 %v3103_v34 }
 0x405   :  { %2872 = vmatpush3.bf16.msra.mxu0 %v3537_v48 }
 0x406   :  { %2615 = vmatmul.mubr.msk.f32.gmra.mrb[20].mxu1 %vm492_vm2, %v364_v52  ;;  %2879 = vmatprep.subr.bf16.mxu0 %v3103_v34 }
 0x407   :  { %2649 = vmatprep.mubr.msk.f32.mxu1 %vm3104_vm0, %v3105_v35  ;;  %2848 = vmatpush3.bf16.msra.mxu1 %v2847_v62 }
 0x408   :  { %2849 = vmatprep.subr.bf16.mxu1 %v3103_v34 }
 0x40b   :  { %2851 = vmatpush3.bf16.msra.mxu1 %v2850_v1 }
 0x40c   :  { %2852 = vmatprep.subr.bf16.mxu1 %v3103_v34 }
 0x40f   :  { %2854 = vmatpush3.bf16.msra.mxu1 %v2853_v10 }
 0x410   :  { %2855 = vmatprep.subr.bf16.mxu1 %v3103_v34 }
 0x4bd   :  { %v2595_v15 = vpop.f32.mrb[6].mxu1 }
 0x4be   :  { %v649_v17 = vpop.f32.mrb[7].mxu1  ;;  %v732_v27 = vmul.f32 %v2595_v15, %v3512_v11 }
 0x4bf   :  { %v731_v24 = vmul.f32 %v3512_v11, %v649_v17 }
 0x4c0   :  { %v748_v37 = vadd.f32 %v732_v27, %v3179_v3 }
 0x4c1   :  { %v747_v30 = vadd.f32 %v731_v24, %v3174_v2  ;;  %v2598_v14 = vpop.f32.mrb[8].mxu1 }
 0x4c2   :  { %v659_v32 = vpop.f32.mrb[9].mxu1  ;;  %v734_v2 = vmul.f32 %v2598_v14, %v3512_v11 }
 0x4c3   :  { %786 = vxpose.xlu1.b32.start [1/16] (narrow) %v747_v30, 24  ;;  %v733_v16 = vmul.f32 %v3512_v11, %v659_v32 }
 0x4c4   :  { %v750_v39 = vadd.f32 %v734_v2, %v3191_v6 }
 0x4c5   :  { %v2601_v18 = vpop.f32.mrb[10].mxu1  ;;  %v749_v3 = vadd.f32 %v733_v16, %v3184_v4 }
 0x4c6   :  { %v669_v42 = vpop.f32.mrb[11].mxu1  ;;  %v736_v54 = vmul.f32 %v2601_v18, %v3512_v11 }
 0x4c7   :  { %787 = vxpose.xlu1.b32.cont [2/16] (narrow) %v748_v37, 24  ;;  %v735_v52 = vmul.f32 %v3512_v11, %v669_v42 }
 0x4c8   :  { %v752_v41 = vadd.f32 %v736_v54, %v3203_v9 }
 0x4c9   :  { %v2604_v21 = vpop.f32.mrb[12].mxu1  ;;  %v751_v55 = vadd.f32 %v735_v52, %v3198_v8 }
 0x4ca   :  { %v679_v44 = vpop.f32.mrb[13].mxu1  ;;  %v738_v43 = vmul.f32 %v2604_v21, %v3512_v11 }
 0x4cb   :  { %788 = vxpose.xlu1.b32.cont [3/16] (narrow) %v749_v3, 24  ;;  %v737_v6 = vmul.f32 %v3512_v11, %v679_v44 }
 0x4cc   :  { %v754_v56 = vadd.f32 %v738_v43, %v3218_v13 }
 0x4cd   :  { %v2607_v4 = vpop.f32.mrb[14].mxu1  ;;  %v753_v47 = vadd.f32 %v737_v6, %v3213_v12 }
 0x4ce   :  { %v689_v50 = vpop.f32.mrb[15].mxu1  ;;  %v740_v58 = vmul.f32 %v2607_v4, %v3512_v11 }
 0x4cf   :  { %789 = vxpose.xlu1.b32.cont [4/16] (narrow) %v750_v39, 24  ;;  %v739_v8 = vmul.f32 %v3512_v11, %v689_v50 }
 0x4d0   :  { %v756_v59 = vadd.f32 %v740_v58, %v3242_v20 }
 0x4d1   :  { %v2610_v40 = vpop.f32.mrb[16].mxu1  ;;  %v755_v9 = vadd.f32 %v739_v8, %v3237_v19 }
 0x4d2   :  { %v699_v57 = vpop.f32.mrb[17].mxu1  ;;  %v742_v12 = vmul.f32 %v2610_v40, %v3512_v11 }
 0x4d3   :  { %790 = vxpose.xlu1.b32.cont [5/16] (narrow) %v751_v55, 24  ;;  %v741_v60 = vmul.f32 %v3512_v11, %v699_v57 }
 0x4d4   :  { %v758_v13 = vadd.f32 %v742_v12, %v3254_v23 }
 0x4d5   :  { %v2613_v45 = vpop.f32.mrb[18].mxu1  ;;  %v757_v61 = vadd.f32 %v741_v60, %v3249_v22 }
 0x4d6   :  { %v709_v38 = vpop.f32.mrb[19].mxu1  ;;  %v744_v63 = vmul.f32 %v2613_v45, %v3512_v11 }
 0x4d7   :  { %791 = vxpose.xlu1.b32.cont [6/16] (narrow) %v752_v41, 24  ;;  %v743_v62 = vmul.f32 %v3512_v11, %v709_v38 }
 0x4d8   :  { %v760_v20 = vadd.f32 %v744_v63, %v3266_v26 }
 0x4d9   :  { %v2616_v51 = vpop.f32.mrb[20].mxu1  ;;  %v759_v19 = vadd.f32 %v743_v62, %v3261_v25 }
 0x4da   :  { %v719_v53 = vpop.f32.mrb[21].mxu1  ;;  %v746_v1 = vmul.f32 %v2616_v51, %v3512_v11 }
 0x4db   :  { %792 = vxpose.xlu1.b32.cont [7/16] (narrow) %v753_v47, 24  ;;  %v745_v0 = vmul.f32 %v3512_v11, %v719_v53 }
 0x4dc   :  { %v762_v23 = vadd.f32 %v746_v1, %v3278_v29 }
 0x4dd   :  { %v761_v22 = vadd.f32 %v745_v0, %v3273_v28 }
 0x4df   :  { %793 = vxpose.xlu1.b32.cont [8/16] (narrow) %v754_v56, 24 }
 0x4e3   :  { %794 = vxpose.xlu1.b32.cont [9/16] (narrow) %v755_v9, 24 }
 0x4e7   :  { %795 = vxpose.xlu1.b32.cont [10/16] (narrow) %v756_v59, 24 }
 0x4eb   :  { %796 = vxpose.xlu1.b32.cont [11/16] (narrow) %v757_v61, 24 }
 0x4ef   :  { %797 = vxpose.xlu1.b32.cont [12/16] (narrow) %v758_v13, 24 }
 0x4f3   :  { %798 = vxpose.xlu1.b32.cont [13/16] (narrow) %v759_v19, 24 }
 0x4f7   :  { %799 = vxpose.xlu1.b32.cont [14/16] (narrow) %v760_v20, 24 }
 0x4fb   :  { %800 = vxpose.xlu1.b32.cont [15/16] (narrow) %v761_v22, 24 }
 0x4ff   :  { %801 = vxpose.xlu1.b32.end [16/16] (narrow) %v762_v23, 24 }
 0x543   :  { %v802_v5 = vpop.trf.xlu1 }
 0x544   :  { %2650 = vmatmul.mubr.f32.vlgmr.msra.gmra.mrb[22].mxu1 %v802_v5 }
 0x545   :  { %2652 = vmatprep.mubr.msk.f32.mxu1 %vm3104_vm0, %v3105_v35  ;;  %2857 = vmatpush3.bf16.msra.mxu1 %v3525_v46 }
 0x546   :  { %2858 = vmatprep.subr.bf16.mxu1 %v3103_v34 }
 0x547   :  { %v803_v25 = vpop.trf.xlu1 }
 0x548   :  { %2653 = vmatmul.mubr.f32.gmra.mrb[24].mxu1 %v803_v25 }
 0x549   :  { %2655 = vmatprep.mubr.msk.f32.mxu1 %vm3104_vm0, %v3105_v35  ;;  %2860 = vmatpush3.bf16.msra.mxu1 %v3537_v48 }
 0x54a   :  { %2861 = vmatprep.subr.bf16.mxu1 %v3103_v34 }
 0x54b   :  { %v804_v26 = vpop.trf.xlu1 }
 0x54c   :  { %2656 = vmatmul.mubr.f32.gmra.mrb[26].mxu1 %v804_v26 }
 0x54d   :  { %2666 = vmatprep.mubr.msk.f32.mxu1 %vm3104_vm0, %v3105_v35 }
 0x550   :  { %2667 = vmatmul.mubr.f32.vlgmr.msra.gmra.mrb[28].mxu1 %v3105_v35 }
 0x551   :  { %2863 = vmatpush3.bf16.msra.mxu1 %v3525_v46  ;;  %2677 = vmatprep.mubr.msk.f32.mxu1 %vm3104_vm0, %v3105_v35 }
 0x552   :  { %2864 = vmatprep.subr.bf16.mxu1 %v3103_v34 }
 0x555   :  { %2866 = vmatpush3.bf16.msra.mxu1 %v3537_v48 }
 0x556   :  { %2873 = vmatprep.subr.bf16.mxu1 %v3103_v34 }
 0x617   :  { %v884_v28 = vpop.f32.mrb[22].mxu1 }
 0x618   :  { %v2651_v29 = vpop.f32.mrb[23].mxu1  ;;  %v3590_v30 = vadd.f32 %v2349_v7, %v884_v28 }
 0x61b   :  { %v889_v10 = vpop.f32.mrb[24].mxu1 }
 0x61c   :  { %v3586_v11 = vadd.f32 %v2349_v7, %v889_v10  ;;  %v2654_v15 = vpop.f32.mrb[25].mxu1 }
 0x61f   :  { %v894_v17 = vpop.f32.mrb[26].mxu1 }
 0x620   :  { %v3588_v24 = vadd.f32 %v2349_v7, %v894_v17  ;;  %v2657_v27 = vpop.f32.mrb[27].mxu1 }
 0x623   :  { %v972_v14 = vpop.f32.mrb[28].mxu1 }
 0x624   :  { %v976_v32 = vadd.f32 %v972_v14, %v3590_v30  ;;  %v2668_v37 = vpop.f32.mrb[29].mxu1 }
 0x626   :  { %2955 = vtanh.f32 %v976_v32  ;;  %v2350_v18 = vmul.f32 -1.442695, %v976_v32 }
 0x628   :  { %2957 = vpow2.f32 %v2350_v18 }
 0x630   :  { %v2956_v16 = vpop.eup %2955 }
 0x631   :  { %986 = vrot.lane.b32.xlu0 %v2956_v16, %s3106_s19 }
 0x632   :  { %v2958_v31 = vpop.eup %2957 }
 0x633   :  { %v980_v36 = vadd.f32 1.0, %v2958_v31 }
 0x635   :  { %2959 = vrcp.f32 %v980_v36 }
 0x63f   :  { %v2960_v42 = vpop.eup %2959 }
 0x640   :  { %v984_v21 = vmul.f32 0.0, %v2960_v42 }
 0x6a3   :  { %v987_v2 = vpop.permute.xlu0 %986 }
 0x6a4   :  { %v989_v3 = vmul.f32 %v2960_v42, %v987_v2 }
 0x6a6   :  { %991 = vrot.lane.b32.xlu0 %v989_v3, %s3107_s5 }
 0x718   :  { %v992_v44 = vpop.permute.xlu0 %991 }
 0x719   :  { %v994_v33 = vadd.f32 %v992_v44, %v984_v21 }
 0x71b   :  { %2961 = vtanh.f32 %v994_v33  ;;  %v1100_v51 = vrot.slane %v994_v33, 6 }
 0x725   :  { %v2962_v49 = vpop.eup %2961 }
 0x726   :  { %997 = vrot.lane.b32.xlu0 %v2962_v49, %s3106_s19 }
 0x798   :  { %v998_v39 = vpop.permute.xlu0 %997 }
 0x799   :  { %v3596_v52 = vmul.f32 %v2960_v42, %v998_v39 }
 0x79b   :  { %1014 = vrot.lane.b32.xlu0 %v3596_v52, %s3107_s5 }
 0x80d   :  { %v1015_v4 = vpop.permute.xlu0 %1014 }
 0x80e   :  { %2678 = vmatmul.mubr.msk.f32.vlgmr.msra.gmra.mrb[30].mxu1 %vm902_vm4, %v1015_v4 }
 0x80f   :  { %2875 = vmatpush3.bf16.msra.mxu1 %v3525_v46  ;;  %2699 = vmatprep.mubr.msk.f32.mxu1 %vm3104_vm0, %v3105_v35 }
 0x810   :  { %2876 = vmatprep.subr.bf16.mxu1 %v3103_v34 }
 0x813   :  { %2878 = vmatpush3.bf16.msra.mxu1 %v3537_v48 }
 0x814   :  { %2885 = vmatprep.subr.bf16.mxu1 %v3103_v34 }
 0x8e1   :  { %v1084_v50 = vpop.f32.mrb[30].mxu1 }
 0x8e2   :  { %v1089_v54 = vrot.slane %v1084_v50, 6  ;;  %v2679_v55 = vpop.f32.mrb[31].mxu1 }
 0x8e4   :  { %v1091_v40 = vadd.f32 %v1089_v54, %v3590_v30 }
 0x8e6   :  { %2963 = vtanh.f32 %v1091_v40  ;;  %v2352_v41 = vmul.f32 -1.442695, %v1091_v40 }
 0x8e8   :  { %2965 = vpow2.f32 %v2352_v41 }
 0x8f0   :  { %v2964_v57 = vpop.eup %2963 }
 0x8f1   :  { %1104 = vrot.lane.b32.xlu0 %v2964_v57, %s3106_s19 }
 0x8f2   :  { %v2966_v6 = vpop.eup %2965 }
 0x8f3   :  { %v1095_v45 = vadd.f32 1.0, %v2966_v6 }
 0x8f5   :  { %2967 = vrcp.f32 %v1095_v45 }
 0x8ff   :  { %v2968_v38 = vpop.eup %2967 }
 0x900   :  { %v1102_v53 = vmul.f32 %v2968_v38, %v1100_v51 }
 0x963   :  { %v1105_v43 = vpop.permute.xlu0 %1104 }
 0x964   :  { %v1107_v47 = vmul.f32 %v2968_v38, %v1105_v43 }
 0x966   :  { %1109 = vrot.lane.b32.xlu0 %v1107_v47, %s3107_s5 }
 0x9d8   :  { %v1110_v56 = vpop.permute.xlu0 %1109 }
 0x9d9   :  { %v1112_v8 = vadd.f32 %v1110_v56, %v1102_v53 }
 0x9db   :  { %2969 = vtanh.f32 %v1112_v8  ;;  %v1220_v25 = vrot.slane %v1112_v8, 6 }
 0x9e5   :  { %v2970_v58 = vpop.eup %2969 }
 0x9e6   :  { %1115 = vrot.lane.b32.xlu0 %v2970_v58, %s3106_s19 }
 0xa58   :  { %v1116_v9 = vpop.permute.xlu0 %1115 }
 0xa59   :  { %v3611_v59 = vmul.f32 %v2968_v38, %v1116_v9 }
 0xa5b   :  { %v1133_v60 = vrot.slane %v3611_v59, 2 }
 0xa5d   :  { %1134 = vrot.lane.b32.xlu0 %v1133_v60, %s3107_s5 }
 0xacf   :  { %v1135_v12 = vpop.permute.xlu0 %1134 }
 0xad0   :  { %2689 = vmatmul.mubr.msk.f32.vlgmr.msra.gmra.mrb[20].mxu0 %vm902_vm4, %v1135_v12 }
 0xad1   :  { %2881 = vmatpush3.bf16.msra.mxu0 %v3525_v46  ;;  %2710 = vmatprep.mubr.msk.f32.mxu0 %vm3104_vm0, %v3105_v35 }
 0xad2   :  { %2882 = vmatprep.subr.bf16.mxu0 %v3103_v34 }
 0xad5   :  { %2884 = vmatpush3.bf16.msra.mxu0 %v3537_v48 }
 0xad6   :  { %2891 = vmatprep.subr.bf16.mxu0 %v3103_v34 }
 0xba3   :  { %v1204_v61 = vpop.f32.mrb[20].mxu0 }
 0xba4   :  { %v1209_v13 = vrot.slane %v1204_v61, 4  ;;  %v2690_v62 = vpop.f32.mrb[21].mxu0 }
 0xba6   :  { %v1211_v63 = vadd.f32 %v1209_v13, %v3590_v30 }
 0xba8   :  { %2971 = vtanh.f32 %v1211_v63  ;;  %v2354_v20 = vmul.f32 -1.442695, %v1211_v63 }
 0xbaa   :  { %2973 = vpow2.f32 %v2354_v20 }
 0xbb2   :  { %v2972_v19 = vpop.eup %2971 }
 0xbb3   :  { %1224 = vrot.lane.b32.xlu0 %v2972_v19, %s3106_s19 }
 0xbb4   :  { %v2974_v0 = vpop.eup %2973 }
 0xbb5   :  { %v1215_v1 = vadd.f32 1.0, %v2974_v0 }
 0xbb7   :  { %2975 = vrcp.f32 %v1215_v1 }
 0xbc1   :  { %v2976_v22 = vpop.eup %2975 }
 0xbc2   :  { %v1222_v26 = vmul.f32 %v2976_v22, %v1220_v25 }
 0xc25   :  { %v1225_v23 = vpop.permute.xlu0 %1224 }
 0xc26   :  { %v1227_v5 = vmul.f32 %v2976_v22, %v1225_v23 }
 0xc28   :  { %1229 = vrot.lane.b32.xlu0 %v1227_v5, %s3107_s5 }
 0xc9a   :  { %v1230_v28 = vpop.permute.xlu0 %1229 }
 0xc9b   :  { %v1232_v29 = vadd.f32 %v1230_v28, %v1222_v26 }
 0xc9d   :  { %2977 = vtanh.f32 %v1232_v29  ;;  %v1340_v44 = vrot.slane %v1232_v29, 6 }
 0xca7   :  { %v2978_v7 = vpop.eup %2977 }
 0xca8   :  { %1235 = vrot.lane.b32.xlu0 %v2978_v7, %s3106_s19 }
 0xd1a   :  { %v1236_v10 = vpop.permute.xlu0 %1235 }
 0xd1b   :  { %v3626_v15 = vmul.f32 %v2976_v22, %v1236_v10 }
 0xd1d   :  { %v1253_v17 = vrot.slane %v3626_v15, 4 }
 0xd1f   :  { %1254 = vrot.lane.b32.xlu0 %v1253_v17, %s3107_s5 }
 0xd91   :  { %v1255_v27 = vpop.permute.xlu0 %1254 }
 0xd92   :  { %2700 = vmatmul.mubr.msk.f32.vlgmr.msra.gmra.mrb[32].mxu1 %vm902_vm4, %v1255_v27 }
 0xd93   :  { %2887 = vmatpush3.bf16.msra.mxu1 %v3525_v46  ;;  %2721 = vmatprep.mubr.msk.f32.mxu1 %vm3104_vm0, %v3105_v35 }
 0xd94   :  { %2888 = vmatprep.subr.bf16.mxu1 %v3103_v34 }
 0xd97   :  { %2890 = vmatpush3.bf16.msra.mxu1 %v3537_v48 }
 0xd98   :  { %2897 = vmatprep.subr.bf16.mxu1 %v3103_v34 }
 0xe65   :  { %v1324_v14 = vpop.f32.mrb[32].mxu1 }
 0xe66   :  { %v1329_v32 = vrot.slane %v1324_v14, 2  ;;  %v2701_v37 = vpop.f32.mrb[33].mxu1 }
 0xe68   :  { %v1331_v16 = vadd.f32 %v1329_v32, %v3590_v30 }
 0xe6a   :  { %2979 = vtanh.f32 %v1331_v16  ;;  %v2356_v31 = vmul.f32 -1.442695, %v1331_v16 }
 0xe6c   :  { %2981 = vpow2.f32 %v2356_v31 }
 0xe74   :  { %v2980_v18 = vpop.eup %2979 }
 0xe75   :  { %1344 = vrot.lane.b32.xlu0 %v2980_v18, %s3106_s19 }
 0xe76   :  { %v2982_v36 = vpop.eup %2981 }
 0xe77   :  { %v1335_v42 = vadd.f32 1.0, %v2982_v36 }
 0xe79   :  { %2983 = vrcp.f32 %v1335_v42 }
 0xe83   :  { %v2984_v2 = vpop.eup %2983 }
 0xe84   :  { %v1342_v33 = vmul.f32 %v2984_v2, %v1340_v44 }
 0xee7   :  { %v1345_v3 = vpop.permute.xlu0 %1344 }
 0xee8   :  { %v1347_v21 = vmul.f32 %v2984_v2, %v1345_v3 }
 0xeea   :  { %1349 = vrot.lane.b32.xlu0 %v1347_v21, %s3107_s5 }
 0xf5c   :  { %v1350_v49 = vpop.permute.xlu0 %1349 }
 0xf5d   :  { %v1352_v39 = vadd.f32 %v1350_v49, %v1342_v33 }
 0xf5f   :  { %2985 = vtanh.f32 %v1352_v39  ;;  %v1456_v56 = vrot.slane %v1352_v39, 6 }
 0xf69   :  { %v2986_v30 = vpop.eup %2985 }
 0xf6a   :  { %1355 = vrot.lane.b32.xlu0 %v2986_v30, %s3106_s19 }
 0xfdc   :  { %v1356_v4 = vpop.permute.xlu0 %1355 }
 0xfdd   :  { %v3641_v50 = vmul.f32 %v2984_v2, %v1356_v4 }
 0xfdf   :  { %v1372_v54 = vrot.slane %v3641_v50, 6 }
 0xfe1   :  { %1373 = vrot.lane.b32.xlu0 %v1372_v54, %s3107_s5 }
0x1053   :  { %v1374_v55 = vpop.permute.xlu0 %1373 }
0x1054   :  { %2711 = vmatmul.mubr.msk.f32.vlgmr.msra.gmra.mrb[22].mxu0 %vm902_vm4, %v1374_v55 }
0x1055   :  { %2893 = vmatpush3.bf16.msra.mxu0 %v3525_v46  ;;  %2732 = vmatprep.mubr.msk.f32.mxu0 %vm3104_vm0, %v3105_v35 }
0x1056   :  { %2894 = vmatprep.subr.bf16.mxu0 %v3103_v34 }
0x1059   :  { %2896 = vmatpush3.bf16.msra.mxu0 %v3537_v48 }
0x105a   :  { %2903 = vmatprep.subr.bf16.mxu0 %v3103_v34 }
0x1127   :  { %v1443_v40 = vpop.f32.mrb[22].mxu0 }
0x1128   :  { %v1447_v57 = vadd.f32 %v1443_v40, %v3586_v11  ;;  %v2712_v41 = vpop.f32.mrb[23].mxu0 }
0x112a   :  { %2987 = vtanh.f32 %v1447_v57  ;;  %v2358_v45 = vmul.f32 -1.442695, %v1447_v57 }
0x112c   :  { %2989 = vpow2.f32 %v2358_v45 }
0x1134   :  { %v2988_v6 = vpop.eup %2987 }
0x1135   :  { %1460 = vrot.lane.b32.xlu0 %v2988_v6, %s3106_s19 }
0x1136   :  { %v2990_v38 = vpop.eup %2989 }
0x1137   :  { %v1451_v43 = vadd.f32 1.0, %v2990_v38 }
0x1139   :  { %2991 = vrcp.f32 %v1451_v43 }
0x1143   :  { %v2992_v47 = vpop.eup %2991 }
0x1144   :  { %v1458_v8 = vmul.f32 %v2992_v47, %v1456_v56 }
0x11a7   :  { %v1461_v51 = vpop.permute.xlu0 %1460 }
0x11a8   :  { %v1463_v53 = vmul.f32 %v2992_v47, %v1461_v51 }
0x11aa   :  { %1465 = vrot.lane.b32.xlu0 %v1463_v53, %s3107_s5 }
0x121c   :  { %v1466_v58 = vpop.permute.xlu0 %1465 }
0x121d   :  { %v1468_v9 = vadd.f32 %v1466_v58, %v1458_v8 }
0x121f   :  { %2993 = vtanh.f32 %v1468_v9  ;;  %v1573_v28 = vrot.slane %v1468_v9, 6 }
0x1229   :  { %v2994_v60 = vpop.eup %2993 }
0x122a   :  { %1471 = vrot.lane.b32.xlu0 %v2994_v60, %s3106_s19 }
0x129c   :  { %v1472_v12 = vpop.permute.xlu0 %1471 }
0x129d   :  { %v3656_v61 = vmul.f32 %v2992_v47, %v1472_v12 }
0x129f   :  { %1487 = vrot.lane.b32.xlu0 %v3656_v61, %s3107_s5 }
0x1311   :  { %v1488_v13 = vpop.permute.xlu0 %1487 }
0x1312   :  { %2722 = vmatmul.mubr.msk.f32.vlgmr.msra.gmra.mrb[34].mxu1 %vm902_vm4, %v1488_v13 }
0x1313   :  { %2899 = vmatpush3.bf16.msra.mxu1 %v3525_v46  ;;  %2743 = vmatprep.mubr.msk.f32.mxu1 %vm3104_vm0, %v3105_v35 }
0x1314   :  { %2900 = vmatprep.subr.bf16.mxu1 %v3103_v34 }
0x1317   :  { %2902 = vmatpush3.bf16.msra.mxu1 %v3537_v48 }
0x1318   :  { %2909 = vmatprep.subr.bf16.mxu1 %v3103_v34 }
0x13e5   :  { %v1557_v62 = vpop.f32.mrb[34].mxu1 }
0x13e6   :  { %v1562_v63 = vrot.slane %v1557_v62, 6  ;;  %v2723_v19 = vpop.f32.mrb[35].mxu1 }
0x13e8   :  { %v1564_v20 = vadd.f32 %v1562_v63, %v3586_v11 }
0x13ea   :  { %2995 = vtanh.f32 %v1564_v20  ;;  %v2360_v1 = vmul.f32 -1.442695, %v1564_v20 }
0x13ec   :  { %2997 = vpow2.f32 %v2360_v1 }
0x13f4   :  { %v2996_v0 = vpop.eup %2995 }
0x13f5   :  { %1577 = vrot.lane.b32.xlu0 %v2996_v0, %s3106_s19 }
0x13f6   :  { %v2998_v22 = vpop.eup %2997 }
0x13f7   :  { %v1568_v23 = vadd.f32 1.0, %v2998_v22 }
0x13f9   :  { %2999 = vrcp.f32 %v1568_v23 }
0x1403   :  { %v3000_v5 = vpop.eup %2999 }
0x1404   :  { %v1575_v29 = vmul.f32 %v3000_v5, %v1573_v28 }
0x1467   :  { %v1578_v25 = vpop.permute.xlu0 %1577 }
0x1468   :  { %v1580_v26 = vmul.f32 %v3000_v5, %v1578_v25 }
0x146a   :  { %1582 = vrot.lane.b32.xlu0 %v1580_v26, %s3107_s5 }
0x14dc   :  { %v1583_v7 = vpop.permute.xlu0 %1582 }
0x14dd   :  { %v1585_v10 = vadd.f32 %v1583_v7, %v1575_v29 }
0x14df   :  { %3001 = vtanh.f32 %v1585_v10  ;;  %v1692_v39 = vrot.slane %v1585_v10, 6 }
0x14e9   :  { %v3002_v17 = vpop.eup %3001 }
0x14ea   :  { %1588 = vrot.lane.b32.xlu0 %v3002_v17, %s3106_s19 }
0x155c   :  { %v1589_v27 = vpop.permute.xlu0 %1588 }
0x155d   :  { %v3671_v14 = vmul.f32 %v3000_v5, %v1589_v27 }
0x155f   :  { %v1605_v32 = vrot.slane %v3671_v14, 2 }
0x1561   :  { %1606 = vrot.lane.b32.xlu0 %v1605_v32, %s3107_s5 }
0x15d3   :  { %v1607_v37 = vpop.permute.xlu0 %1606 }
0x15d4   :  { %2733 = vmatmul.mubr.msk.f32.vlgmr.msra.gmra.mrb[24].mxu0 %vm902_vm4, %v1607_v37 }
0x15d5   :  { %2905 = vmatpush3.bf16.msra.mxu0 %v3525_v46  ;;  %2754 = vmatprep.mubr.msk.f32.mxu0 %vm3104_vm0, %v3105_v35 }
0x15d6   :  { %2906 = vmatprep.subr.bf16.mxu0 %v3103_v34 }
0x15d9   :  { %2908 = vmatpush3.bf16.msra.mxu0 %v3537_v48 }
0x15da   :  { %2915 = vmatprep.subr.bf16.mxu0 %v3103_v34 }
0x16a7   :  { %v1676_v16 = vpop.f32.mrb[24].mxu0 }
0x16a8   :  { %v1681_v18 = vrot.slane %v1676_v16, 4  ;;  %v2734_v31 = vpop.f32.mrb[25].mxu0 }
0x16aa   :  { %v1683_v36 = vadd.f32 %v1681_v18, %v3586_v11 }
0x16ac   :  { %3003 = vtanh.f32 %v1683_v36  ;;  %v2362_v2 = vmul.f32 -1.442695, %v1683_v36 }
0x16ae   :  { %3005 = vpow2.f32 %v2362_v2 }
0x16b6   :  { %v3004_v42 = vpop.eup %3003 }
0x16b7   :  { %1696 = vrot.lane.b32.xlu0 %v3004_v42, %s3106_s19 }
0x16b8   :  { %v3006_v3 = vpop.eup %3005 }
0x16b9   :  { %v1687_v21 = vadd.f32 1.0, %v3006_v3 }
0x16bb   :  { %3007 = vrcp.f32 %v1687_v21 }
0x16c5   :  { %v3008_v44 = vpop.eup %3007 }
0x16c6   :  { %v1694_v30 = vmul.f32 %v3008_v44, %v1692_v39 }
0x1729   :  { %v1697_v33 = vpop.permute.xlu0 %1696 }
0x172a   :  { %v1699_v49 = vmul.f32 %v3008_v44, %v1697_v33 }
0x172c   :  { %1701 = vrot.lane.b32.xlu1 %v1699_v49, %s3107_s5 }
0x179e   :  { %v1702_v4 = vpop.permute.xlu1 %1701 }
0x179f   :  { %v1704_v54 = vadd.f32 %v1702_v4, %v1694_v30 }
0x17a1   :  { %3009 = vtanh.f32 %v1704_v54  ;;  %v1811_v12 = vrot.slane %v1704_v54, 6 }
0x17ab   :  { %v3010_v55 = vpop.eup %3009 }
0x17ac   :  { %1707 = vrot.lane.b32.xlu0 %v3010_v55, %s3106_s19 }
0x181e   :  { %v1708_v40 = vpop.permute.xlu0 %1707 }
0x181f   :  { %v3686_v57 = vmul.f32 %v3008_v44, %v1708_v40 }
0x1821   :  { %v1724_v41 = vrot.slane %v3686_v57, 4 }
0x1823   :  { %1725 = vrot.lane.b32.xlu0 %v1724_v41, %s3107_s5 }
0x1895   :  { %v1726_v6 = vpop.permute.xlu0 %1725 }
0x1896   :  { %2744 = vmatmul.mubr.msk.f32.vlgmr.msra.gmra.mrb[36].mxu1 %vm902_vm4, %v1726_v6 }
0x1897   :  { %2911 = vmatpush3.bf16.msra.mxu1 %v3525_v46  ;;  %2765 = vmatprep.mubr.msk.f32.mxu1 %vm3104_vm0, %v3105_v35 }
0x1898   :  { %2912 = vmatprep.subr.bf16.mxu1 %v3103_v34 }
0x189b   :  { %2914 = vmatpush3.bf16.msra.mxu1 %v3537_v48 }
0x189c   :  { %2921 = vmatprep.subr.bf16.mxu1 %v3103_v34 }
0x1969   :  { %v1795_v45 = vpop.f32.mrb[36].mxu1 }
0x196a   :  { %v1800_v38 = vrot.slane %v1795_v45, 2  ;;  %v2745_v43 = vpop.f32.mrb[37].mxu1 }
0x196c   :  { %v1802_v47 = vadd.f32 %v1800_v38, %v3586_v11 }
0x196e   :  { %3011 = vtanh.f32 %v1802_v47  ;;  %v2364_v53 = vmul.f32 -1.442695, %v1802_v47 }
0x1970   :  { %3013 = vpow2.f32 %v2364_v53 }
0x1978   :  { %v3012_v51 = vpop.eup %3011 }
0x1979   :  { %1815 = vrot.lane.b32.xlu0 %v3012_v51, %s3106_s19 }
0x197a   :  { %v3014_v56 = vpop.eup %3013 }
0x197b   :  { %v1806_v8 = vadd.f32 1.0, %v3014_v56 }
0x197d   :  { %3015 = vrcp.f32 %v1806_v8 }
0x1987   :  { %v3016_v58 = vpop.eup %3015 }
0x1988   :  { %v1813_v13 = vmul.f32 %v3016_v58, %v1811_v12 }
0x19eb   :  { %v1816_v9 = vpop.permute.xlu0 %1815 }
0x19ec   :  { %v1818_v60 = vmul.f32 %v3016_v58, %v1816_v9 }
0x19ee   :  { %1820 = vrot.lane.b32.xlu0 %v1818_v60, %s3107_s5 }
0x1a60   :  { %v1821_v62 = vpop.permute.xlu0 %1820 }
0x1a61   :  { %v1823_v63 = vadd.f32 %v1821_v62, %v1813_v13 }
0x1a63   :  { %3017 = vtanh.f32 %v1823_v63  ;;  %v1926_v27 = vrot.slane %v1823_v63, 6 }
0x1a6d   :  { %v3018_v11 = vpop.eup %3017 }
0x1a6e   :  { %1826 = vrot.lane.b32.xlu0 %v3018_v11, %s3106_s19 }
0x1ae0   :  { %v1827_v19 = vpop.permute.xlu0 %1826 }
0x1ae1   :  { %v3701_v20 = vmul.f32 %v3016_v58, %v1827_v19 }
0x1ae3   :  { %v1842_v0 = vrot.slane %v3701_v20, 6 }
0x1ae5   :  { %1843 = vrot.lane.b32.xlu0 %v1842_v0, %s3107_s5 }
0x1b57   :  { %v1844_v1 = vpop.permute.xlu0 %1843 }
0x1b58   :  { %2755 = vmatmul.mubr.msk.f32.vlgmr.msra.gmra.mrb[26].mxu0 %vm902_vm4, %v1844_v1 }
0x1b59   :  { %2917 = vmatpush3.bf16.msra.mxu0 %v3525_v46  ;;  %2776 = vmatprep.mubr.msk.f32.mxu0 %vm3104_vm0, %v3105_v35 }
0x1b5a   :  { %2918 = vmatprep.subr.bf16.mxu0 %v3103_v34 }
0x1b5d   :  { %2920 = vmatpush3.bf16.msra.mxu0 %v3537_v48 }
0x1c2b   :  { %v1913_v22 = vpop.f32.mrb[26].mxu0 }
0x1c2c   :  { %v1917_v23 = vadd.f32 %v1913_v22, %v3588_v24  ;;  %v2756_v5 = vpop.f32.mrb[27].mxu0 }
0x1c2e   :  { %3019 = vtanh.f32 %v1917_v23  ;;  %v2366_v26 = vmul.f32 -1.442695, %v1917_v23 }
0x1c30   :  { %3021 = vpow2.f32 %v2366_v26 }
0x1c38   :  { %v3020_v25 = vpop.eup %3019 }
0x1c39   :  { %1930 = vrot.lane.b32.xlu0 %v3020_v25, %s3106_s19 }
0x1c3a   :  { %v3022_v28 = vpop.eup %3021 }
0x1c3b   :  { %v1921_v29 = vadd.f32 1.0, %v3022_v28 }
0x1c3d   :  { %3023 = vrcp.f32 %v1921_v29 }
0x1c47   :  { %v3024_v7 = vpop.eup %3023 }
0x1c48   :  { %v1928_v32 = vmul.f32 %v3024_v7, %v1926_v27 }
0x1cab   :  { %v1931_v10 = vpop.permute.xlu0 %1930 }
0x1cac   :  { %v1933_v17 = vmul.f32 %v3024_v7, %v1931_v10 }
0x1cae   :  { %1935 = vrot.lane.b32.xlu1 %v1933_v17, %s3107_s5  ;;  %v1005_v17 = vlaneseq }
0x1d20   :  { %v1936_v37 = vpop.permute.xlu1 %1935 }
0x1d21   :  { %v1938_v16 = vadd.f32 %v1936_v37, %v1928_v32  ;;  %v1006_v32 = vshrl.u32 %v1005_v17, 7 }
0x1d23   :  { %3025 = vtanh.f32 %v1938_v16 }
0x1d2d   :  { %v3026_v18 = vpop.eup %3025 }
0x1d2e   :  { %1941 = vrot.lane.b32.xlu0 %v3026_v18, %s3106_s19 }
0x1da0   :  { %v1942_v31 = vpop.permute.xlu0 %1941 }
0x1da1   :  { %v3715_v36 = vmul.f32 %v3024_v7, %v1942_v31  ;;  %v3108_v7 = vmov 1983009808  }
0x1da2   :  { %v1003_v10 = vunpack.c.l.s4 %v3108_v7 }
0x1da3   :  { %1957 = vrot.lane.b32.xlu1 %v3715_v36, %s3107_s5 }
0x1da4   :  { %v1004_v27 = vunpack.c.0.s8 %v1003_v10 }
0x1e15   :  { %v1958_v42 = vpop.permute.xlu1 %1957 }
0x1e16   :  { %2766 = vmatmul.mubr.msk.f32.vlgmr.msra.gmra.mrb[38].mxu1 %vm902_vm4, %v1958_v42 }
0x1e17   :  { %2923 = vmatpush3.bf16.msra.mxu1 %v3525_v46  ;;  %2787 = vmatprep.mubr.msk.f32.mxu1 %vm3104_vm0, %v3105_v35 }
0x1e18   :  { %2924 = vmatprep.subr.bf16.mxu1 %v3103_v34  ;;  %v2043_v34 = vrot.slane %v1938_v16, 6  ;;  %v3741_v16 = vsub.s32 %v1004_v27, %v1006_v32 }
0x1e1a   :  { %v1126_v18 = vrot.slane %v3611_v59, %v3741_v16  ;;  %v1482_v31 = vrot.slane %v3656_v61, %v3741_v16  ;;  %v1008_v61 = vrot.slane %v3596_v52, %v3741_v16 }
0x1e1b   :  { %2926 = vmatpush3.bf16.msra.mxu1 %v3537_v48 }
0x1ee9   :  { %v2027_v2 = vpop.f32.mrb[38].mxu1 }
0x1eea   :  { %v2032_v3 = vrot.slane %v2027_v2, 6  ;;  %v2767_v21 = vpop.f32.mrb[39].mxu1 }
0x1eec   :  { %v2034_v44 = vadd.f32 %v2032_v3, %v3588_v24 }
0x1eee   :  { %3027 = vtanh.f32 %v2034_v44  ;;  %v2368_v49 = vmul.f32 -1.442695, %v2034_v44 }
0x1ef0   :  { %3029 = vpow2.f32 %v2368_v49  ;;  %v1599_v49 = vrot.slane %v3671_v14, %v3741_v16 }
0x1ef8   :  { %v3028_v33 = vpop.eup %3027 }
0x1ef9   :  { %2047 = vrot.lane.b32.xlu0 %v3028_v33, %s3106_s19 }
0x1efa   :  { %v3030_v39 = vpop.eup %3029 }
0x1efb   :  { %v2038_v46 = vadd.f32 1.0, %v3030_v39  ;;  %v1952_v39 = vrot.slane %v3715_v36, %v3741_v16 }
0x1efd   :  { %3031 = vrcp.f32 %v2038_v46  ;;  %v1240_v46 = vcombine.high %v3626_v15, %v3626_v15 }
0x1eff   :  { %v1247_v52 = vrot.slane %v1240_v46, %v3741_v16 }
0x1f07   :  { %v3032_v30 = vpop.eup %3031 }
0x1f08   :  { %v2045_v48 = vmul.f32 %v3032_v30, %v2043_v34 }
0x1f6b   :  { %v2048_v35 = vpop.permute.xlu0 %2047 }
0x1f6c   :  { %v2050_v4 = vmul.f32 %v3032_v30, %v2048_v35 }
0x1f6e   :  { %2052 = vrot.lane.b32.xlu1 %v2050_v4, %s3107_s5 }
0x1fe0   :  { %v2053_v54 = vpop.permute.xlu1 %2052 }
0x1fe1   :  { %v2055_v55 = vadd.f32 %v2053_v54, %v2045_v48 }
0x1fe3   :  { %3033 = vtanh.f32 %v2055_v55  ;;  %v2162_v62 = vrot.slane %v2055_v55, 6  ;;  %v1360_v55 = vcombine.high %v3641_v50, %v3641_v50  ;;  %v1712_v50 = vcombine.high %v3686_v57, %v3686_v57 }
0x1fed   :  { %v3034_v40 = vpop.eup %3033 }
0x1fee   :  { %2058 = vrot.lane.b32.xlu0 %v3034_v40, %s3106_s19 }
0x2060   :  { %v2059_v41 = vpop.permute.xlu0 %2058 }
0x2061   :  { %v3729_v6 = vmul.f32 %v3032_v30, %v2059_v41  ;;  %v1600_v30 = vcombine.high %v1599_v49, %v1599_v49  ;;  %v1367_v41 = vrot.slane %v1360_v55, %v3741_v16 }
0x2063   :  { %v2075_v45 = vrot.slane %v3729_v6, 2 }
0x2065   :  { %2076 = vrot.lane.b32.xlu1 %v2075_v45, %s3107_s5  ;;  %v2069_v45 = vrot.slane %v3729_v6, %v3741_v16  ;;  %v1719_v6 = vrot.slane %v1712_v50, %v3741_v16 }
0x20d7   :  { %v2077_v38 = vpop.permute.xlu1 %2076 }
0x20d8   :  { %2777 = vmatmul.mubr.msk.f32.vlgmr.msra.gmra.mrb[28].mxu0 %vm902_vm4, %v2077_v38 }
0x21ab   :  { %v2146_v43 = vpop.f32.mrb[28].mxu0 }
0x21ac   :  { %v2151_v47 = vrot.slane %v2146_v43, 4  ;;  %v2778_v51 = vpop.f32.mrb[29].mxu0 }
0x21ad   :  { %v2070_v51 = vcombine.high %v2069_v45, %v2069_v45 }
0x21ae   :  { %v2153_v53 = vadd.f32 %v2151_v47, %v3588_v24  ;;  %v1368_v47 = vcombine.high %v1367_v41, %v1367_v41 }
0x21b0   :  { %3035 = vtanh.f32 %v2153_v53  ;;  %v2370_v8 = vmul.f32 -1.442695, %v2153_v53 }
0x21b2   :  { %3037 = vpow2.f32 %v2370_v8 }
0x21ba   :  { %v3036_v56 = vpop.eup %3035 }
0x21bb   :  { %2166 = vrot.lane.b32.xlu0 %v3036_v56, %s3106_s19  ;;  %v1831_v56 = vcombine.high %v3701_v20, %v3701_v20 }
0x21bc   :  { %v3038_v58 = vpop.eup %3037 }
0x21bd   :  { %v2157_v9 = vadd.f32 1.0, %v3038_v58  ;;  %v1838_v57 = vrot.slane %v1831_v56, %v3741_v16 }
0x21bf   :  { %3039 = vrcp.f32 %v2157_v9 }
0x21c9   :  { %v3040_v60 = vpop.eup %3039 }
0x21ca   :  { %v2164_v63 = vmul.f32 %v3040_v60, %v2162_v62 }
0x222d   :  { %v2167_v12 = vpop.permute.xlu0 %2166 }
0x222e   :  { %v2169_v13 = vmul.f32 %v3040_v60, %v2167_v12 }
0x2230   :  { %2171 = vrot.lane.b32.xlu1 %v2169_v13, %s3107_s5 }
0x22a2   :  { %v2172_v11 = vpop.permute.xlu1 %2171 }
0x22a3   :  { %v2174_v19 = vadd.f32 %v2172_v11, %v2164_v63  ;;  %v1839_v63 = vcombine.high %v1838_v57, %v1838_v57 }
0x22a5   :  { %3041 = vtanh.f32 %v2174_v19  ;;  %v2281_v14 = vrot.slane %v2174_v19, 6 }
0x22af   :  { %v3042_v0 = vpop.eup %3041 }
0x22b0   :  { %2177 = vrot.lane.b32.xlu0 %v3042_v0, %s3106_s19 }
0x2322   :  { %v2178_v1 = vpop.permute.xlu0 %2177 }
0x2323   :  { %v2180_v22 = vmul.f32 %v3040_v60, %v2178_v1 }
0x2325   :  { %v2194_v23 = vrot.slane %v2180_v22, 4  ;;  %v2182_v35 = vcombine.high %v2180_v22, %v2180_v22 }
0x2327   :  { %2195 = vrot.lane.b32.xlu1 %v2194_v23, %s3107_s5  ;;  %v2189_v4 = vrot.slane %v2182_v35, %v3741_v16 }
0x2399   :  { %v2196_v5 = vpop.permute.xlu1 %2195 }
0x239a   :  { %2788 = vmatmul.mubr.msk.f32.vlgmr.msra.gmra.mrb[40].mxu1 %vm902_vm4, %v2196_v5 }
0x246d   :  { %v2265_v25 = vpop.f32.mrb[40].mxu1 }
0x246e   :  { %v2270_v26 = vrot.slane %v2265_v25, 2  ;;  %v2789_v28 = vpop.f32.mrb[41].mxu1 }
0x2470   :  { %v2272_v29 = vadd.f32 %v2270_v26, %v3588_v24  ;;  %v1127_v24 = vcombine.high %v1126_v18, %v1126_v18 }
0x2472   :  { %3043 = vtanh.f32 %v2272_v29  ;;  %v2372_v42 = vmul.f32 -1.442695, %v2272_v29 }
0x2474   :  { %3045 = vpow2.f32 %v2372_v42 }
0x247c   :  { %v3044_v37 = vpop.eup %3043 }
0x247d   :  { %2285 = vrot.lane.b32.xlu0 %v3044_v37, %s3106_s19 }
0x247e   :  { %v3046_v2 = vpop.eup %3045 }
0x247f   :  { %v2276_v3 = vadd.f32 1.0, %v3046_v2 }
0x2481   :  { %1483 = vrot.lane.b32.xlu0 %v1482_v31, %s3107_s5  ;;  %3047 = vrcp.f32 %v2276_v3 }
0x2485   :  { %1128 = vrot.lane.b32.xlu0 %v1127_v24, %s3106_s19 }
0x248b   :  { %v3048_v21 = vpop.eup %3047 }
0x248c   :  { %v2283_v36 = vmul.f32 %v3048_v21, %v2281_v14 }
0x24ef   :  { %v2286_v44 = vpop.permute.xlu0 %2285 }
0x24f0   :  { %v2288_v33 = vmul.f32 %v3048_v21, %v2286_v44 }
0x24f2   :  { %2290 = vrot.lane.b32.xlu1 %v2288_v33, %s3107_s5 }
0x24f3   :  { %v1484_v59 = vpop.permute.xlu0 %1483 }
0x24f4   :  { %1486 = vst.msk [vmem:[#allocation6 + $0x2] sm:$0x3] %vm1012_vm5, %v1484_v59 }
0x24f6   :  { %1009 = vrot.lane.b32.xlu1 %v1008_v61, %s3107_s5 }
0x24f7   :  { %v1129_v54 = vpop.permute.xlu0 %1128 }
0x24fa   :  { %1953 = vrot.lane.b32.xlu1 %v1952_v39, %s3107_s5 }
0x24fe   :  { %1601 = vrot.lane.b32.xlu1 %v1600_v30, %s3106_s19 }
0x2502   :  { %1248 = vrot.lane.b32.xlu1 %v1247_v52, %s3109_s20 }
0x2506   :  { %2190 = vrot.lane.b32.xlu1 %v2189_v4, %s3109_s20 }
0x2564   :  { %v2291_v34 = vpop.permute.xlu1 %2290 }
0x2565   :  { %v2293_v48 = vadd.f32 %v2291_v34, %v2283_v36 }
0x2567   :  { %3049 = vtanh.f32 %v2293_v48 }
0x2568   :  { %v1010_v15 = vpop.permute.xlu1 %1009 }
0x2569   :  { %1013 = vst.msk [vmem:[#allocation6] sm:$0x3] %vm1012_vm5, %v1010_v15 }
0x256a   :  { %1132 = vst.msk [vmem:[#allocation6] sm:$0x3] %vm1131_vm6, %v1129_v54 }
0x256c   :  { %v1954_v40 = vpop.permute.xlu1 %1953 }
0x256d   :  { %1956 = vst.msk [vmem:[#allocation6 + $0x4] sm:$0x3] %vm1012_vm5, %v1954_v40 }
0x2570   :  { %v1602_v38 = vpop.permute.xlu1 %1601 }
0x2571   :  { %v3050_v43 = vpop.eup %3049  ;;  %1604 = vst.msk [vmem:[#allocation6 + $0x2] sm:$0x3] %vm1131_vm6, %v1602_v38 }
0x2572   :  { %2296 = vrot.lane.b32.xlu0 %v3050_v43, %s3106_s19 }
0x2574   :  { %v1249_v53 = vpop.permute.xlu1 %1248 }
0x2575   :  { %1252 = vst.msk [vmem:[#allocation6] sm:$0x3] %vm1251_vm7, %v1249_v53 }
0x2576   :  { %2071 = vrot.lane.b32.xlu0 %v2070_v51, %s3106_s19  ;;  %1371 = vst.msk [vmem:[#allocation6] sm:$0x3] %vm1370_vm8, %v1368_v47 }
0x2578   :  { %v2191_v12 = vpop.permute.xlu1 %2190 }
0x257a   :  { %1720 = vrot.lane.b32.xlu0 %v1719_v6, %s3109_s20 }
0x25e4   :  { %v2297_v8 = vpop.permute.xlu0 %2296 }
0x25e5   :  { %v2299_v58 = vmul.f32 %v3048_v21, %v2297_v8 }
0x25e7   :  { %v2301_v9 = vcombine.high %v2299_v58, %v2299_v58 }
0x25e8   :  { %v2072_v60 = vpop.permute.xlu0 %2071 }
0x25e9   :  { %v2308_v13 = vrot.slane %v2301_v9, %v3741_v16  ;;  %2074 = vst.msk [vmem:[#allocation6 + $0x4] sm:$0x3] %vm1131_vm6, %v2072_v60 }
0x25ea   :  { %2193 = vst.msk [vmem:[#allocation6 + $0x4] sm:$0x3] %vm1251_vm7, %v2191_v12 }
0x25eb   :  { %v2309_v62 = vcombine.high %v2308_v13, %v2308_v13 }
0x25ec   :  { %v1721_v11 = vpop.permute.xlu0 %1720 }
0x25ed   :  { %1723 = vst.msk [vmem:[#allocation6 + $0x2] sm:$0x3] %vm1251_vm7, %v1721_v11 }
0x25ee   :  { %2311 = vst.msk [vmem:[#allocation6 + $0x4] sm:$0x3] %vm1370_vm8, %v2309_v62  ;;  %1841 = vst.msk [vmem:[#allocation6 + $0x2] sm:$0x3] %vm1370_vm8, %v1839_v63 }
0x25ef   :  { %3084 = shalt.err (!%p3081_p12)
}
0x25f0   :  { %s3085_s1 = scalar_lea.hbm %s3813_s8, 96 }
0x25f1   :  { %p3086_p13 = scmp.ne.s32.totalorder %s3813_s8, %s3085_s1  ;;  %p3089_p0 = scmp.lt.u32.totalorder %s3085_s1, %s3813_s8 }
0x25f3   :  { %p3091_p1 = pnand %p3089_p0, %p3086_p13 }
0x25f5   :  { %3094 = shalt.err (!%p3091_p1)
}
0x25f6   :  { %2321 = dma.vmem_to_hbm [thread:$0]  %s2319_s22, 96, %s3813_s8, [#allocation5]  }
0x25f7   :  { %3097 = dma.done.wait [#allocation5], 96  }
0x25f8   :  { %3098 = vsyncadd [#allocation5], 4294967200 }
0x25f9   :  { %2325 = vsyncpa [#allocation4], 1 }
0x25fa   :  { %2326 = vsyncpa [#allocation5], 1 }

</bundles_post_ra>
